<compile_context>
chip_gen: v6e
topology: v6e:2x2x1
jax: 0.10.0
libtpu: 0.0.40
codegen_flags: <defaults>
</compile_context>

<pallas_src>
import jax
import jax.numpy as jnp
from jax import lax
from jax.experimental import pallas as pl
from jax.experimental.pallas import tpu as pltpu

LEAKY_SLOPE = 0.1
BN_EPS = 1e-5
_TAPS = tuple((oy, ox) for oy in (-1, 0, 1) for ox in (-1, 0, 1))  # dy-major, dx-minor


# ----------------------------- Pallas kernel ------------------------------ #
def _make_block5l_kernel(layer_ks, W, L):
    """layer_ks: kernel size (1 or 3) per fused layer; W: image width; L: lane size."""

    def kernel(x_ref, mask_ref, *refs):
        # refs = [w0, b0, ..., w5, b5, out_ref, stacked_scratch]
        *wb_refs, out_ref, stacked_ref = refs
        h = x_ref[0].astype(jnp.float32)                        # (Cin, L)
        for li, ksize in enumerate(layer_ks):
            w_ref = wb_refs[2 * li]                             # bf16 folded weights
            b_ref = wb_refs[2 * li + 1]                         # f32 (Cout, 1) bias
            if ksize == 1:
                y = jnp.dot(w_ref[...], h.astype(jnp.bfloat16),
                            preferred_element_type=jnp.float32)
            else:
                # 3x3, pad=1, stride=1: build the (9*Cin, L) stacked operand in
                # VMEM scratch (roll + one mask-multiply per tap), then a single
                # K=9*Cin MXU matmul with pre-stacked (Cout, 9*Cin) weights.
                cin = h.shape[0]
                for t, (oy, ox) in enumerate(_TAPS):
                    off = oy * W + ox
                    if off == 0:
                        hs = h                                   # center tap, no mask
                    else:
                        # want hs[:, p] = h[:, p + off] (circular; mask fixes wrap)
                        hs = pltpu.roll(h, shift=(-off) % L, axis=1)
                        hs = hs * mask_ref[t]                    # zero-padding mask
                    stacked_ref[pl.ds(t * cin, cin), :] = hs
                y = jnp.dot(w_ref[...],
                            stacked_ref[...].astype(jnp.bfloat16),
                            preferred_element_type=jnp.float32)
            y = y + b_ref[...]                                   # folded-BN bias (f32)
            h = jnp.maximum(y, LEAKY_SLOPE * y)                  # leaky ReLU (f32)
        out_ref[0] = h.astype(out_ref.dtype)

    return kernel


# ------------------------------ JAX glue ---------------------------------- #
def _const_block(shape):
    """BlockSpec for an array fully resident and identical every grid step."""
    nd = len(shape)
    return pl.BlockSpec(shape, lambda b: (0,) * nd)


def _make_tap_masks(H, W, cin):
    """0/1 masks (9, cin, H*W) implementing zero padding for each 3x3 tap offset.

    Pre-broadcast over cin so the in-kernel mask multiply needs no broadcast_in_dim.
    """
    hh, ww = jnp.meshgrid(jnp.arange(H), jnp.arange(W), indexing="ij")
    masks = []
    for oy, ox in _TAPS:
        valid = ((hh + oy >= 0) & (hh + oy < H) & (ww + ox >= 0) & (ww + ox < W))
        masks.append(valid.reshape(1, H * W))
    m = jnp.stack(masks, axis=0).astype(jnp.float32)            # (9, 1, HW)
    return jnp.broadcast_to(m, (9, cin, H * W))


def _prepare_params(params):
    """Fold eval-mode BN into weights/bias; pre-stack 3x3 weights to (Cout, 9*Cin)."""
    # TODO(synk): BatchNorm is applied in eval mode (running stats); training-mode
    # batch statistics are not reproduced here.
    prepared = []
    for (w, gamma, beta, mean, var, k) in params:
        cout, cin = w.shape[0], w.shape[1]
        scale = gamma / jnp.sqrt(var + BN_EPS)
        bias = (beta - mean * scale).reshape(cout, 1).astype(jnp.float32)
        if k == 1:
            wk = (w.reshape(cout, cin) * scale[:, None]).astype(jnp.bfloat16)
        else:
            # OIHW -> (Cout, ky, kx, Cin) -> (Cout, 9*Cin).  Column index is
            # t*Cin + ci with t = (oy+1)*3 + (ox+1), matching the stacked-operand
            # row order written by the kernel.
            wk = (jnp.transpose(w, (0, 2, 3, 1)).reshape(cout, 9 * cin)
                  * scale[:, None]).astype(jnp.bfloat16)
        prepared.append((k, cout, cin, wk, bias))
    return prepared


def _single_tensorcore():
    """True on 1-TC chips (v5e/v6e): fold batch into lanes.  v7x keeps grid=(N,)."""
    try:
        kind = jax.devices()[0].device_kind.lower()
    except Exception:
        return True
    return "v7" not in kind


def conv2d_block_5l(x_nchw, params, fold_batch=None):
    """Forward pass of Conv2dBlock5L. Input/output are NCHW like PyTorch."""
    N, Cin, H, W = x_nchw.shape
    HW = H * W
    prepared = _prepare_params(params)
    layer_ks = [p[0] for p in prepared]
    c_last = prepared[-1][1]
    cin3_all = [p[2] for p in prepared if p[0] == 3]
    assert cin3_all and all(c == cin3_all[0] for c in cin3_all)
    cin3 = cin3_all[0]

    if fold_batch is None:
        fold_batch = _single_tensorcore()

    masks = _make_tap_masks(H, W, cin3)                         # (9, cin3, HW)
    if fold_batch:
        # Batch folded into the lane axis: one big lane-dense tile, grid=(1,).
        B, L = 1, N * HW
        x_in = jnp.transpose(x_nchw.reshape(N, Cin, HW), (1, 0, 2)).reshape(1, Cin, L)
        masks = jnp.tile(masks, (1, 1, N))                      # per-image masks
    else:
        # One image per grid step (v7x: batch spans both TensorCores).
        B, L = N, HW
        x_in = x_nchw.reshape(N, Cin, HW)

    flat_params, param_specs = [], []
    for (_k, _cout, _cin, wk, bias) in prepared:
        flat_params += [wk, bias]
        param_specs += [_const_block(wk.shape), _const_block(bias.shape)]

    out = pl.pallas_call(
        _make_block5l_kernel(layer_ks, W, L),
        out_shape=jax.ShapeDtypeStruct((B, c_last, L), jnp.float32),
        grid_spec=pltpu.PrefetchScalarGridSpec(
            num_scalar_prefetch=0,
            grid=(B,),
            in_specs=[pl.BlockSpec((1, Cin, L), lambda b: (b, 0, 0)),
                      _const_block(masks.shape)] + param_specs,
            out_specs=pl.BlockSpec((1, c_last, L), lambda b: (b, 0, 0)),
            scratch_shapes=[pltpu.VMEM((9 * cin3, L), jnp.float32)],
        ),
        compiler_params=pltpu.CompilerParams(dimension_semantics=("parallel",)),
    )(x_in, masks, *flat_params)

    if fold_batch:
        out = jnp.transpose(out.reshape(c_last, N, HW), (1, 0, 2))
    return out.reshape(N, c_last, H, W)


def init_conv2d_block_5l(key, in_channels, out_channels):
    """Deterministic parameter init mirroring Conv2dBlock5L.__init__ shapes."""
    c1, c2 = out_channels
    layer_specs = [
        (in_channels, c1, 1), (c1, c2, 3), (c2, c1, 1),
        (c1, c2, 3), (c2, c1, 1), (c1, c2, 3),
    ]
    params = []
    for cin, cout, k in layer_specs:
        key, kw, kg, kb, km, kv = jax.random.split(key, 6)
        w = 0.1 * jax.random.normal(kw, (cout, cin, k, k), jnp.float32)   # OIHW
        gamma = 1.0 + 0.1 * jax.random.normal(kg, (cout,), jnp.float32)
        beta = 0.1 * jax.random.normal(kb, (cout,), jnp.float32)
        mean = 0.1 * jax.random.normal(km, (cout,), jnp.float32)
        var = jax.random.uniform(kv, (cout,), jnp.float32, 0.5, 1.5)
        params.append((w, gamma, beta, mean, var, k))
    return params


# --------------------------- pure-JAX reference ---------------------------- #
def _reference_forward(x_nchw, params):
    x = x_nchw
    for (w, g, b, m, v, k) in params:
        pad = k // 2
        y = lax.conv_general_dilated(
            x, w, window_strides=(1, 1), padding=[(pad, pad), (pad, pad)],
            dimension_numbers=("NCHW", "OIHW", "NCHW"))
        scale = g / jnp.sqrt(v + BN_EPS)
        bias = b - m * scale
        y = y * scale[None, :, None, None] + bias[None, :, None, None]
        x = jnp.where(y > 0, y, LEAKY_SLOPE * y)
    return x


if __name__ == "__main__":
    key = jax.random.PRNGKey(0)
    kx, kp = jax.random.split(key)

    batch, in_channels, H, W = 2, 4, 16, 16
    out_channels = [8, 16]                                   # [c1, c2]

    x = jax.random.normal(kx, (batch, in_channels, H, W), jnp.float32)
    params = init_conv2d_block_5l(kp, in_channels, out_channels)

    out = jax.block_until_ready(conv2d_block_5l(x, params))
    assert out.shape == (batch, out_channels[1], H, W), out.shape

    ref = jax.block_until_ready(_reference_forward(x, params))
    assert jnp.allclose(out, ref, rtol=2e-2, atol=2e-2), (
        float(jnp.max(jnp.abs(out - ref))))

    print("KERNEL_OK")
</pallas_src>

<mosaic_0001>
module attributes {stable_mosaic.version = 11 : i64} {
  func.func @kernel(%arg0: i32, %arg1: memref<1x4x512xf32, #tpu.memory_space<vmem>>, %arg2: memref<9x8x512xf32, #tpu.memory_space<vmem>>, %arg3: memref<8x4xbf16, #tpu.memory_space<vmem>>, %arg4: memref<8x1xf32, #tpu.memory_space<vmem>>, %arg5: memref<16x72xbf16, #tpu.memory_space<vmem>>, %arg6: memref<16x1xf32, #tpu.memory_space<vmem>>, %arg7: memref<8x16xbf16, #tpu.memory_space<vmem>>, %arg8: memref<8x1xf32, #tpu.memory_space<vmem>>, %arg9: memref<16x72xbf16, #tpu.memory_space<vmem>>, %arg10: memref<16x1xf32, #tpu.memory_space<vmem>>, %arg11: memref<8x16xbf16, #tpu.memory_space<vmem>>, %arg12: memref<8x1xf32, #tpu.memory_space<vmem>>, %arg13: memref<16x72xbf16, #tpu.memory_space<vmem>>, %arg14: memref<16x1xf32, #tpu.memory_space<vmem>>, %arg15: memref<1x16x512xf32, #tpu.memory_space<vmem>>, %arg16: memref<72x512xf32, #tpu.memory_space<vmem>>) attributes {dimension_semantics = [#tpu.dimension_semantics<parallel>], iteration_bounds = array<i64: 1>, scalar_prefetch = 0 : i64, scratch_operands = 1 : i64, tpu.core_type = #tpu.core_type<tc>, window_params = [{transform_indices = @transform_0, window_bounds = array<i64: 1, 4, 512>}, {pipeline_mode = #tpu.pipeline_mode<synchronous>, transform_indices = @transform_1, window_bounds = array<i64: 9, 8, 512>}, {pipeline_mode = #tpu.pipeline_mode<synchronous>, transform_indices = @transform_2, window_bounds = array<i64: 8, 4>}, {pipeline_mode = #tpu.pipeline_mode<synchronous>, transform_indices = @transform_3, window_bounds = array<i64: 8, 1>}, {pipeline_mode = #tpu.pipeline_mode<synchronous>, transform_indices = @transform_4, window_bounds = array<i64: 16, 72>}, {pipeline_mode = #tpu.pipeline_mode<synchronous>, transform_indices = @transform_5, window_bounds = array<i64: 16, 1>}, {pipeline_mode = #tpu.pipeline_mode<synchronous>, transform_indices = @transform_6, window_bounds = array<i64: 8, 16>}, {pipeline_mode = #tpu.pipeline_mode<synchronous>, transform_indices = @transform_7, window_bounds = array<i64: 8, 1>}, {pipeline_mode = #tpu.pipeline_mode<synchronous>, transform_indices = @transform_8, window_bounds = array<i64: 16, 72>}, {pipeline_mode = #tpu.pipeline_mode<synchronous>, transform_indices = @transform_9, window_bounds = array<i64: 16, 1>}, {pipeline_mode = #tpu.pipeline_mode<synchronous>, transform_indices = @transform_10, window_bounds = array<i64: 8, 16>}, {pipeline_mode = #tpu.pipeline_mode<synchronous>, transform_indices = @transform_11, window_bounds = array<i64: 8, 1>}, {pipeline_mode = #tpu.pipeline_mode<synchronous>, transform_indices = @transform_12, window_bounds = array<i64: 16, 72>}, {pipeline_mode = #tpu.pipeline_mode<synchronous>, transform_indices = @transform_13, window_bounds = array<i64: 16, 1>}, {transform_indices = @transform_14, window_bounds = array<i64: 1, 16, 512>}]} {
    %c0 = arith.constant 0 : index
    %c0_0 = arith.constant 0 : index
    %c0_1 = arith.constant 0 : index
    %0 = vector.load %arg1[%c0, %c0_0, %c0_1] : memref<1x4x512xf32, #tpu.memory_space<vmem>>, vector<1x4x512xf32>
    %1 = vector.shape_cast %0 : vector<1x4x512xf32> to vector<4x512xf32>
    %c0_2 = arith.constant 0 : index
    %c0_3 = arith.constant 0 : index
    %2 = vector.load %arg3[%c0_2, %c0_3] : memref<8x4xbf16, #tpu.memory_space<vmem>>, vector<8x4xbf16>
    %3 = arith.truncf %1 : vector<4x512xf32> to vector<4x512xbf16>
    %cst = arith.constant dense<0.000000e+00> : vector<8x512xf32>
    %4 = tpu.matmul %2, %3, %cst {dimension_numbers = #tpu.dot_dimension_numbers<[1], [0], [0], [1], [0, 0, 1, 1], [], []>} : vector<8x4xbf16>, vector<4x512xbf16>, vector<8x512xf32> -> vector<8x512xf32>
    %c0_4 = arith.constant 0 : index
    %c0_5 = arith.constant 0 : index
    %5 = vector.load %arg4[%c0_4, %c0_5] : memref<8x1xf32, #tpu.memory_space<vmem>>, vector<8x1xf32>
    %6 = vector.broadcast %5 : vector<8x1xf32> to vector<8x512xf32>
    %7 = arith.addf %4, %6 : vector<8x512xf32>
    %cst_6 = arith.constant 1.000000e-01 : f32
    %8 = vector.broadcast %cst_6 : f32 to vector<8x512xf32>
    %9 = arith.mulf %8, %7 : vector<8x512xf32>
    %10 = arith.maximumf %7, %9 : vector<8x512xf32>
    %c17_i32 = arith.constant 17 : i32
    %11 = tpu.dynamic_rotate %10 by %c17_i32 dim 1 : vector<8x512xf32>, i32 -> vector<8x512xf32>
    %c0_7 = arith.constant 0 : index
    %c0_8 = arith.constant 0 : index
    %c0_9 = arith.constant 0 : index
    %12 = vector.load %arg2[%c0_7, %c0_8, %c0_9] : memref<9x8x512xf32, #tpu.memory_space<vmem>>, vector<1x8x512xf32>
    %13 = vector.shape_cast %12 : vector<1x8x512xf32> to vector<8x512xf32>
    %14 = arith.mulf %11, %13 : vector<8x512xf32>
    %c0_10 = arith.constant 0 : index
    %c0_11 = arith.constant 0 : index
    %15 = vector.load %arg16[%c0_10, %c0_11] : memref<72x512xf32, #tpu.memory_space<vmem>>, vector<8x512xf32>
    tpu.vector_store %arg16[%c0_10, %c0_11], %14 {strides = array<i32>} : memref<72x512xf32, #tpu.memory_space<vmem>>, vector<8x512xf32>,
    %c16_i32 = arith.constant 16 : i32
    %16 = tpu.dynamic_rotate %10 by %c16_i32 dim 1 : vector<8x512xf32>, i32 -> vector<8x512xf32>
    %c1 = arith.constant 1 : index
    %c0_12 = arith.constant 0 : index
    %c0_13 = arith.constant 0 : index
    %17 = vector.load %arg2[%c1, %c0_12, %c0_13] : memref<9x8x512xf32, #tpu.memory_space<vmem>>, vector<1x8x512xf32>
    %18 = vector.shape_cast %17 : vector<1x8x512xf32> to vector<8x512xf32>
    %19 = arith.mulf %16, %18 : vector<8x512xf32>
    %c8 = arith.constant 8 : index
    %c0_14 = arith.constant 0 : index
    %20 = vector.load %arg16[%c8, %c0_14] : memref<72x512xf32, #tpu.memory_space<vmem>>, vector<8x512xf32>
    tpu.vector_store %arg16[%c8, %c0_14], %19 {strides = array<i32>} : memref<72x512xf32, #tpu.memory_space<vmem>>, vector<8x512xf32>,
    %c15_i32 = arith.constant 15 : i32
    %21 = tpu.dynamic_rotate %10 by %c15_i32 dim 1 : vector<8x512xf32>, i32 -> vector<8x512xf32>
    %c2 = arith.constant 2 : index
    %c0_15 = arith.constant 0 : index
    %c0_16 = arith.constant 0 : index
    %22 = vector.load %arg2[%c2, %c0_15, %c0_16] : memref<9x8x512xf32, #tpu.memory_space<vmem>>, vector<1x8x512xf32>
    %23 = vector.shape_cast %22 : vector<1x8x512xf32> to vector<8x512xf32>
    %24 = arith.mulf %21, %23 : vector<8x512xf32>
    %c16 = arith.constant 16 : index
    %c0_17 = arith.constant 0 : index
    %25 = vector.load %arg16[%c16, %c0_17] : memref<72x512xf32, #tpu.memory_space<vmem>>, vector<8x512xf32>
    tpu.vector_store %arg16[%c16, %c0_17], %24 {strides = array<i32>} : memref<72x512xf32, #tpu.memory_space<vmem>>, vector<8x512xf32>,
    %c1_i32 = arith.constant 1 : i32
    %26 = tpu.dynamic_rotate %10 by %c1_i32 dim 1 : vector<8x512xf32>, i32 -> vector<8x512xf32>
    %c3 = arith.constant 3 : index
    %c0_18 = arith.constant 0 : index
    %c0_19 = arith.constant 0 : index
    %27 = vector.load %arg2[%c3, %c0_18, %c0_19] : memref<9x8x512xf32, #tpu.memory_space<vmem>>, vector<1x8x512xf32>
    %28 = vector.shape_cast %27 : vector<1x8x512xf32> to vector<8x512xf32>
    %29 = arith.mulf %26, %28 : vector<8x512xf32>
    %c24 = arith.constant 24 : index
    %c0_20 = arith.constant 0 : index
    %30 = vector.load %arg16[%c24, %c0_20] : memref<72x512xf32, #tpu.memory_space<vmem>>, vector<8x512xf32>
    tpu.vector_store %arg16[%c24, %c0_20], %29 {strides = array<i32>} : memref<72x512xf32, #tpu.memory_space<vmem>>, vector<8x512xf32>,
    %c32 = arith.constant 32 : index
    %c0_21 = arith.constant 0 : index
    %31 = vector.load %arg16[%c32, %c0_21] : memref<72x512xf32, #tpu.memory_space<vmem>>, vector<8x512xf32>
    tpu.vector_store %arg16[%c32, %c0_21], %10 {strides = array<i32>} : memref<72x512xf32, #tpu.memory_space<vmem>>, vector<8x512xf32>,
    %c511_i32 = arith.constant 511 : i32
    %32 = tpu.dynamic_rotate %10 by %c511_i32 dim 1 : vector<8x512xf32>, i32 -> vector<8x512xf32>
    %c5 = arith.constant 5 : index
    %c0_22 = arith.constant 0 : index
    %c0_23 = arith.constant 0 : index
    %33 = vector.load %arg2[%c5, %c0_22, %c0_23] : memref<9x8x512xf32, #tpu.memory_space<vmem>>, vector<1x8x512xf32>
    %34 = vector.shape_cast %33 : vector<1x8x512xf32> to vector<8x512xf32>
    %35 = arith.mulf %32, %34 : vector<8x512xf32>
    %c40 = arith.constant 40 : index
    %c0_24 = arith.constant 0 : index
    %36 = vector.load %arg16[%c40, %c0_24] : memref<72x512xf32, #tpu.memory_space<vmem>>, vector<8x512xf32>
    tpu.vector_store %arg16[%c40, %c0_24], %35 {strides = array<i32>} : memref<72x512xf32, #tpu.memory_space<vmem>>, vector<8x512xf32>,
    %c497_i32 = arith.constant 497 : i32
    %37 = tpu.dynamic_rotate %10 by %c497_i32 dim 1 : vector<8x512xf32>, i32 -> vector<8x512xf32>
    %c6 = arith.constant 6 : index
    %c0_25 = arith.constant 0 : index
    %c0_26 = arith.constant 0 : index
    %38 = vector.load %arg2[%c6, %c0_25, %c0_26] : memref<9x8x512xf32, #tpu.memory_space<vmem>>, vector<1x8x512xf32>
    %39 = vector.shape_cast %38 : vector<1x8x512xf32> to vector<8x512xf32>
    %40 = arith.mulf %37, %39 : vector<8x512xf32>
    %c48 = arith.constant 48 : index
    %c0_27 = arith.constant 0 : index
    %41 = vector.load %arg16[%c48, %c0_27] : memref<72x512xf32, #tpu.memory_space<vmem>>, vector<8x512xf32>
    tpu.vector_store %arg16[%c48, %c0_27], %40 {strides = array<i32>} : memref<72x512xf32, #tpu.memory_space<vmem>>, vector<8x512xf32>,
    %c496_i32 = arith.constant 496 : i32
    %42 = tpu.dynamic_rotate %10 by %c496_i32 dim 1 : vector<8x512xf32>, i32 -> vector<8x512xf32>
    %c7 = arith.constant 7 : index
    %c0_28 = arith.constant 0 : index
    %c0_29 = arith.constant 0 : index
    %43 = vector.load %arg2[%c7, %c0_28, %c0_29] : memref<9x8x512xf32, #tpu.memory_space<vmem>>, vector<1x8x512xf32>
    %44 = vector.shape_cast %43 : vector<1x8x512xf32> to vector<8x512xf32>
    %45 = arith.mulf %42, %44 : vector<8x512xf32>
    %c56 = arith.constant 56 : index
    %c0_30 = arith.constant 0 : index
    %46 = vector.load %arg16[%c56, %c0_30] : memref<72x512xf32, #tpu.memory_space<vmem>>, vector<8x512xf32>
    tpu.vector_store %arg16[%c56, %c0_30], %45 {strides = array<i32>} : memref<72x512xf32, #tpu.memory_space<vmem>>, vector<8x512xf32>,
    %c495_i32 = arith.constant 495 : i32
    %47 = tpu.dynamic_rotate %10 by %c495_i32 dim 1 : vector<8x512xf32>, i32 -> vector<8x512xf32>
    %c8_31 = arith.constant 8 : index
    %c0_32 = arith.constant 0 : index
    %c0_33 = arith.constant 0 : index
    %48 = vector.load %arg2[%c8_31, %c0_32, %c0_33] : memref<9x8x512xf32, #tpu.memory_space<vmem>>, vector<1x8x512xf32>
    %49 = vector.shape_cast %48 : vector<1x8x512xf32> to vector<8x512xf32>
    %50 = arith.mulf %47, %49 : vector<8x512xf32>
    %c64 = arith.constant 64 : index
    %c0_34 = arith.constant 0 : index
    %51 = vector.load %arg16[%c64, %c0_34] : memref<72x512xf32, #tpu.memory_space<vmem>>, vector<8x512xf32>
    tpu.vector_store %arg16[%c64, %c0_34], %50 {strides = array<i32>} : memref<72x512xf32, #tpu.memory_space<vmem>>, vector<8x512xf32>,
    %c0_35 = arith.constant 0 : index
    %c0_36 = arith.constant 0 : index
    %52 = vector.load %arg5[%c0_35, %c0_36] : memref<16x72xbf16, #tpu.memory_space<vmem>>, vector<16x72xbf16>
    %c0_37 = arith.constant 0 : index
    %c0_38 = arith.constant 0 : index
    %53 = vector.load %arg16[%c0_37, %c0_38] : memref<72x512xf32, #tpu.memory_space<vmem>>, vector<72x512xf32>
    %54 = arith.truncf %53 : vector<72x512xf32> to vector<72x512xbf16>
    %cst_39 = arith.constant dense<0.000000e+00> : vector<16x512xf32>
    %55 = tpu.matmul %52, %54, %cst_39 {dimension_numbers = #tpu.dot_dimension_numbers<[1], [0], [0], [1], [0, 0, 1, 1], [], []>} : vector<16x72xbf16>, vector<72x512xbf16>, vector<16x512xf32> -> vector<16x512xf32>
    %c0_40 = arith.constant 0 : index
    %c0_41 = arith.constant 0 : index
    %56 = vector.load %arg6[%c0_40, %c0_41] : memref<16x1xf32, #tpu.memory_space<vmem>>, vector<16x1xf32>
    %57 = vector.broadcast %56 : vector<16x1xf32> to vector<16x512xf32>
    %58 = arith.addf %55, %57 : vector<16x512xf32>
    %cst_42 = arith.constant 1.000000e-01 : f32
    %59 = vector.broadcast %cst_42 : f32 to vector<16x512xf32>
    %60 = arith.mulf %59, %58 : vector<16x512xf32>
    %61 = arith.maximumf %58, %60 : vector<16x512xf32>
    %c0_43 = arith.constant 0 : index
    %c0_44 = arith.constant 0 : index
    %62 = vector.load %arg7[%c0_43, %c0_44] : memref<8x16xbf16, #tpu.memory_space<vmem>>, vector<8x16xbf16>
    %63 = arith.truncf %61 : vector<16x512xf32> to vector<16x512xbf16>
    %cst_45 = arith.constant dense<0.000000e+00> : vector<8x512xf32>
    %64 = tpu.matmul %62, %63, %cst_45 {dimension_numbers = #tpu.dot_dimension_numbers<[1], [0], [0], [1], [0, 0, 1, 1], [], []>} : vector<8x16xbf16>, vector<16x512xbf16>, vector<8x512xf32> -> vector<8x512xf32>
    %c0_46 = arith.constant 0 : index
    %c0_47 = arith.constant 0 : index
    %65 = vector.load %arg8[%c0_46, %c0_47] : memref<8x1xf32, #tpu.memory_space<vmem>>, vector<8x1xf32>
    %66 = vector.broadcast %65 : vector<8x1xf32> to vector<8x512xf32>
    %67 = arith.addf %64, %66 : vector<8x512xf32>
    %cst_48 = arith.constant 1.000000e-01 : f32
    %68 = vector.broadcast %cst_48 : f32 to vector<8x512xf32>
    %69 = arith.mulf %68, %67 : vector<8x512xf32>
    %70 = arith.maximumf %67, %69 : vector<8x512xf32>
    %c17_i32_49 = arith.constant 17 : i32
    %71 = tpu.dynamic_rotate %70 by %c17_i32_49 dim 1 : vector<8x512xf32>, i32 -> vector<8x512xf32>
    %c0_50 = arith.constant 0 : index
    %c0_51 = arith.constant 0 : index
    %c0_52 = arith.constant 0 : index
    %72 = vector.load %arg2[%c0_50, %c0_51, %c0_52] : memref<9x8x512xf32, #tpu.memory_space<vmem>>, vector<1x8x512xf32>
    %73 = vector.shape_cast %72 : vector<1x8x512xf32> to vector<8x512xf32>
    %74 = arith.mulf %71, %73 : vector<8x512xf32>
    %c0_53 = arith.constant 0 : index
    %c0_54 = arith.constant 0 : index
    %75 = vector.load %arg16[%c0_53, %c0_54] : memref<72x512xf32, #tpu.memory_space<vmem>>, vector<8x512xf32>
    tpu.vector_store %arg16[%c0_53, %c0_54], %74 {strides = array<i32>} : memref<72x512xf32, #tpu.memory_space<vmem>>, vector<8x512xf32>,
    %c16_i32_55 = arith.constant 16 : i32
    %76 = tpu.dynamic_rotate %70 by %c16_i32_55 dim 1 : vector<8x512xf32>, i32 -> vector<8x512xf32>
    %c1_56 = arith.constant 1 : index
    %c0_57 = arith.constant 0 : index
    %c0_58 = arith.constant 0 : index
    %77 = vector.load %arg2[%c1_56, %c0_57, %c0_58] : memref<9x8x512xf32, #tpu.memory_space<vmem>>, vector<1x8x512xf32>
    %78 = vector.shape_cast %77 : vector<1x8x512xf32> to vector<8x512xf32>
    %79 = arith.mulf %76, %78 : vector<8x512xf32>
    %c8_59 = arith.constant 8 : index
    %c0_60 = arith.constant 0 : index
    %80 = vector.load %arg16[%c8_59, %c0_60] : memref<72x512xf32, #tpu.memory_space<vmem>>, vector<8x512xf32>
    tpu.vector_store %arg16[%c8_59, %c0_60], %79 {strides = array<i32>} : memref<72x512xf32, #tpu.memory_space<vmem>>, vector<8x512xf32>,
    %c15_i32_61 = arith.constant 15 : i32
    %81 = tpu.dynamic_rotate %70 by %c15_i32_61 dim 1 : vector<8x512xf32>, i32 -> vector<8x512xf32>
    %c2_62 = arith.constant 2 : index
    %c0_63 = arith.constant 0 : index
    %c0_64 = arith.constant 0 : index
    %82 = vector.load %arg2[%c2_62, %c0_63, %c0_64] : memref<9x8x512xf32, #tpu.memory_space<vmem>>, vector<1x8x512xf32>
    %83 = vector.shape_cast %82 : vector<1x8x512xf32> to vector<8x512xf32>
    %84 = arith.mulf %81, %83 : vector<8x512xf32>
    %c16_65 = arith.constant 16 : index
    %c0_66 = arith.constant 0 : index
    %85 = vector.load %arg16[%c16_65, %c0_66] : memref<72x512xf32, #tpu.memory_space<vmem>>, vector<8x512xf32>
    tpu.vector_store %arg16[%c16_65, %c0_66], %84 {strides = array<i32>} : memref<72x512xf32, #tpu.memory_space<vmem>>, vector<8x512xf32>,
    %c1_i32_67 = arith.constant 1 : i32
    %86 = tpu.dynamic_rotate %70 by %c1_i32_67 dim 1 : vector<8x512xf32>, i32 -> vector<8x512xf32>
    %c3_68 = arith.constant 3 : index
    %c0_69 = arith.constant 0 : index
    %c0_70 = arith.constant 0 : index
    %87 = vector.load %arg2[%c3_68, %c0_69, %c0_70] : memref<9x8x512xf32, #tpu.memory_space<vmem>>, vector<1x8x512xf32>
    %88 = vector.shape_cast %87 : vector<1x8x512xf32> to vector<8x512xf32>
    %89 = arith.mulf %86, %88 : vector<8x512xf32>
    %c24_71 = arith.constant 24 : index
    %c0_72 = arith.constant 0 : index
    %90 = vector.load %arg16[%c24_71, %c0_72] : memref<72x512xf32, #tpu.memory_space<vmem>>, vector<8x512xf32>
    tpu.vector_store %arg16[%c24_71, %c0_72], %89 {strides = array<i32>} : memref<72x512xf32, #tpu.memory_space<vmem>>, vector<8x512xf32>,
    %c32_73 = arith.constant 32 : index
    %c0_74 = arith.constant 0 : index
    %91 = vector.load %arg16[%c32_73, %c0_74] : memref<72x512xf32, #tpu.memory_space<vmem>>, vector<8x512xf32>
    tpu.vector_store %arg16[%c32_73, %c0_74], %70 {strides = array<i32>} : memref<72x512xf32, #tpu.memory_space<vmem>>, vector<8x512xf32>,
    %c511_i32_75 = arith.constant 511 : i32
    %92 = tpu.dynamic_rotate %70 by %c511_i32_75 dim 1 : vector<8x512xf32>, i32 -> vector<8x512xf32>
    %c5_76 = arith.constant 5 : index
    %c0_77 = arith.constant 0 : index
    %c0_78 = arith.constant 0 : index
    %93 = vector.load %arg2[%c5_76, %c0_77, %c0_78] : memref<9x8x512xf32, #tpu.memory_space<vmem>>, vector<1x8x512xf32>
    %94 = vector.shape_cast %93 : vector<1x8x512xf32> to vector<8x512xf32>
    %95 = arith.mulf %92, %94 : vector<8x512xf32>
    %c40_79 = arith.constant 40 : index
    %c0_80 = arith.constant 0 : index
    %96 = vector.load %arg16[%c40_79, %c0_80] : memref<72x512xf32, #tpu.memory_space<vmem>>, vector<8x512xf32>
    tpu.vector_store %arg16[%c40_79, %c0_80], %95 {strides = array<i32>} : memref<72x512xf32, #tpu.memory_space<vmem>>, vector<8x512xf32>,
    %c497_i32_81 = arith.constant 497 : i32
    %97 = tpu.dynamic_rotate %70 by %c497_i32_81 dim 1 : vector<8x512xf32>, i32 -> vector<8x512xf32>
    %c6_82 = arith.constant 6 : index
    %c0_83 = arith.constant 0 : index
    %c0_84 = arith.constant 0 : index
    %98 = vector.load %arg2[%c6_82, %c0_83, %c0_84] : memref<9x8x512xf32, #tpu.memory_space<vmem>>, vector<1x8x512xf32>
    %99 = vector.shape_cast %98 : vector<1x8x512xf32> to vector<8x512xf32>
    %100 = arith.mulf %97, %99 : vector<8x512xf32>
    %c48_85 = arith.constant 48 : index
    %c0_86 = arith.constant 0 : index
    %101 = vector.load %arg16[%c48_85, %c0_86] : memref<72x512xf32, #tpu.memory_space<vmem>>, vector<8x512xf32>
    tpu.vector_store %arg16[%c48_85, %c0_86], %100 {strides = array<i32>} : memref<72x512xf32, #tpu.memory_space<vmem>>, vector<8x512xf32>,
    %c496_i32_87 = arith.constant 496 : i32
    %102 = tpu.dynamic_rotate %70 by %c496_i32_87 dim 1 : vector<8x512xf32>, i32 -> vector<8x512xf32>
    %c7_88 = arith.constant 7 : index
    %c0_89 = arith.constant 0 : index
    %c0_90 = arith.constant 0 : index
    %103 = vector.load %arg2[%c7_88, %c0_89, %c0_90] : memref<9x8x512xf32, #tpu.memory_space<vmem>>, vector<1x8x512xf32>
    %104 = vector.shape_cast %103 : vector<1x8x512xf32> to vector<8x512xf32>
    %105 = arith.mulf %102, %104 : vector<8x512xf32>
    %c56_91 = arith.constant 56 : index
    %c0_92 = arith.constant 0 : index
    %106 = vector.load %arg16[%c56_91, %c0_92] : memref<72x512xf32, #tpu.memory_space<vmem>>, vector<8x512xf32>
    tpu.vector_store %arg16[%c56_91, %c0_92], %105 {strides = array<i32>} : memref<72x512xf32, #tpu.memory_space<vmem>>, vector<8x512xf32>,
    %c495_i32_93 = arith.constant 495 : i32
    %107 = tpu.dynamic_rotate %70 by %c495_i32_93 dim 1 : vector<8x512xf32>, i32 -> vector<8x512xf32>
    %c8_94 = arith.constant 8 : index
    %c0_95 = arith.constant 0 : index
    %c0_96 = arith.constant 0 : index
    %108 = vector.load %arg2[%c8_94, %c0_95, %c0_96] : memref<9x8x512xf32, #tpu.memory_space<vmem>>, vector<1x8x512xf32>
    %109 = vector.shape_cast %108 : vector<1x8x512xf32> to vector<8x512xf32>
    %110 = arith.mulf %107, %109 : vector<8x512xf32>
    %c64_97 = arith.constant 64 : index
    %c0_98 = arith.constant 0 : index
    %111 = vector.load %arg16[%c64_97, %c0_98] : memref<72x512xf32, #tpu.memory_space<vmem>>, vector<8x512xf32>
    tpu.vector_store %arg16[%c64_97, %c0_98], %110 {strides = array<i32>} : memref<72x512xf32, #tpu.memory_space<vmem>>, vector<8x512xf32>,
    %c0_99 = arith.constant 0 : index
    %c0_100 = arith.constant 0 : index
    %112 = vector.load %arg9[%c0_99, %c0_100] : memref<16x72xbf16, #tpu.memory_space<vmem>>, vector<16x72xbf16>
    %c0_101 = arith.constant 0 : index
    %c0_102 = arith.constant 0 : index
    %113 = vector.load %arg16[%c0_101, %c0_102] : memref<72x512xf32, #tpu.memory_space<vmem>>, vector<72x512xf32>
    %114 = arith.truncf %113 : vector<72x512xf32> to vector<72x512xbf16>
    %cst_103 = arith.constant dense<0.000000e+00> : vector<16x512xf32>
    %115 = tpu.matmul %112, %114, %cst_103 {dimension_numbers = #tpu.dot_dimension_numbers<[1], [0], [0], [1], [0, 0, 1, 1], [], []>} : vector<16x72xbf16>, vector<72x512xbf16>, vector<16x512xf32> -> vector<16x512xf32>
    %c0_104 = arith.constant 0 : index
    %c0_105 = arith.constant 0 : index
    %116 = vector.load %arg10[%c0_104, %c0_105] : memref<16x1xf32, #tpu.memory_space<vmem>>, vector<16x1xf32>
    %117 = vector.broadcast %116 : vector<16x1xf32> to vector<16x512xf32>
    %118 = arith.addf %115, %117 : vector<16x512xf32>
    %cst_106 = arith.constant 1.000000e-01 : f32
    %119 = vector.broadcast %cst_106 : f32 to vector<16x512xf32>
    %120 = arith.mulf %119, %118 : vector<16x512xf32>
    %121 = arith.maximumf %118, %120 : vector<16x512xf32>
    %c0_107 = arith.constant 0 : index
    %c0_108 = arith.constant 0 : index
    %122 = vector.load %arg11[%c0_107, %c0_108] : memref<8x16xbf16, #tpu.memory_space<vmem>>, vector<8x16xbf16>
    %123 = arith.truncf %121 : vector<16x512xf32> to vector<16x512xbf16>
    %cst_109 = arith.constant dense<0.000000e+00> : vector<8x512xf32>
    %124 = tpu.matmul %122, %123, %cst_109 {dimension_numbers = #tpu.dot_dimension_numbers<[1], [0], [0], [1], [0, 0, 1, 1], [], []>} : vector<8x16xbf16>, vector<16x512xbf16>, vector<8x512xf32> -> vector<8x512xf32>
    %c0_110 = arith.constant 0 : index
    %c0_111 = arith.constant 0 : index
    %125 = vector.load %arg12[%c0_110, %c0_111] : memref<8x1xf32, #tpu.memory_space<vmem>>, vector<8x1xf32>
    %126 = vector.broadcast %125 : vector<8x1xf32> to vector<8x512xf32>
    %127 = arith.addf %124, %126 : vector<8x512xf32>
    %cst_112 = arith.constant 1.000000e-01 : f32
    %128 = vector.broadcast %cst_112 : f32 to vector<8x512xf32>
    %129 = arith.mulf %128, %127 : vector<8x512xf32>
    %130 = arith.maximumf %127, %129 : vector<8x512xf32>
    %c17_i32_113 = arith.constant 17 : i32
    %131 = tpu.dynamic_rotate %130 by %c17_i32_113 dim 1 : vector<8x512xf32>, i32 -> vector<8x512xf32>
    %c0_114 = arith.constant 0 : index
    %c0_115 = arith.constant 0 : index
    %c0_116 = arith.constant 0 : index
    %132 = vector.load %arg2[%c0_114, %c0_115, %c0_116] : memref<9x8x512xf32, #tpu.memory_space<vmem>>, vector<1x8x512xf32>
    %133 = vector.shape_cast %132 : vector<1x8x512xf32> to vector<8x512xf32>
    %134 = arith.mulf %131, %133 : vector<8x512xf32>
    %c0_117 = arith.constant 0 : index
    %c0_118 = arith.constant 0 : index
    %135 = vector.load %arg16[%c0_117, %c0_118] : memref<72x512xf32, #tpu.memory_space<vmem>>, vector<8x512xf32>
    tpu.vector_store %arg16[%c0_117, %c0_118], %134 {strides = array<i32>} : memref<72x512xf32, #tpu.memory_space<vmem>>, vector<8x512xf32>,
    %c16_i32_119 = arith.constant 16 : i32
    %136 = tpu.dynamic_rotate %130 by %c16_i32_119 dim 1 : vector<8x512xf32>, i32 -> vector<8x512xf32>
    %c1_120 = arith.constant 1 : index
    %c0_121 = arith.constant 0 : index
    %c0_122 = arith.constant 0 : index
    %137 = vector.load %arg2[%c1_120, %c0_121, %c0_122] : memref<9x8x512xf32, #tpu.memory_space<vmem>>, vector<1x8x512xf32>
    %138 = vector.shape_cast %137 : vector<1x8x512xf32> to vector<8x512xf32>
    %139 = arith.mulf %136, %138 : vector<8x512xf32>
    %c8_123 = arith.constant 8 : index
    %c0_124 = arith.constant 0 : index
    %140 = vector.load %arg16[%c8_123, %c0_124] : memref<72x512xf32, #tpu.memory_space<vmem>>, vector<8x512xf32>
    tpu.vector_store %arg16[%c8_123, %c0_124], %139 {strides = array<i32>} : memref<72x512xf32, #tpu.memory_space<vmem>>, vector<8x512xf32>,
    %c15_i32_125 = arith.constant 15 : i32
    %141 = tpu.dynamic_rotate %130 by %c15_i32_125 dim 1 : vector<8x512xf32>, i32 -> vector<8x512xf32>
    %c2_126 = arith.constant 2 : index
    %c0_127 = arith.constant 0 : index
    %c0_128 = arith.constant 0 : index
    %142 = vector.load %arg2[%c2_126, %c0_127, %c0_128] : memref<9x8x512xf32, #tpu.memory_space<vmem>>, vector<1x8x512xf32>
    %143 = vector.shape_cast %142 : vector<1x8x512xf32> to vector<8x512xf32>
    %144 = arith.mulf %141, %143 : vector<8x512xf32>
    %c16_129 = arith.constant 16 : index
    %c0_130 = arith.constant 0 : index
    %145 = vector.load %arg16[%c16_129, %c0_130] : memref<72x512xf32, #tpu.memory_space<vmem>>, vector<8x512xf32>
    tpu.vector_store %arg16[%c16_129, %c0_130], %144 {strides = array<i32>} : memref<72x512xf32, #tpu.memory_space<vmem>>, vector<8x512xf32>,
    %c1_i32_131 = arith.constant 1 : i32
    %146 = tpu.dynamic_rotate %130 by %c1_i32_131 dim 1 : vector<8x512xf32>, i32 -> vector<8x512xf32>
    %c3_132 = arith.constant 3 : index
    %c0_133 = arith.constant 0 : index
    %c0_134 = arith.constant 0 : index
    %147 = vector.load %arg2[%c3_132, %c0_133, %c0_134] : memref<9x8x512xf32, #tpu.memory_space<vmem>>, vector<1x8x512xf32>
    %148 = vector.shape_cast %147 : vector<1x8x512xf32> to vector<8x512xf32>
    %149 = arith.mulf %146, %148 : vector<8x512xf32>
    %c24_135 = arith.constant 24 : index
    %c0_136 = arith.constant 0 : index
    %150 = vector.load %arg16[%c24_135, %c0_136] : memref<72x512xf32, #tpu.memory_space<vmem>>, vector<8x512xf32>
    tpu.vector_store %arg16[%c24_135, %c0_136], %149 {strides = array<i32>} : memref<72x512xf32, #tpu.memory_space<vmem>>, vector<8x512xf32>,
    %c32_137 = arith.constant 32 : index
    %c0_138 = arith.constant 0 : index
    %151 = vector.load %arg16[%c32_137, %c0_138] : memref<72x512xf32, #tpu.memory_space<vmem>>, vector<8x512xf32>
    tpu.vector_store %arg16[%c32_137, %c0_138], %130 {strides = array<i32>} : memref<72x512xf32, #tpu.memory_space<vmem>>, vector<8x512xf32>,
    %c511_i32_139 = arith.constant 511 : i32
    %152 = tpu.dynamic_rotate %130 by %c511_i32_139 dim 1 : vector<8x512xf32>, i32 -> vector<8x512xf32>
    %c5_140 = arith.constant 5 : index
    %c0_141 = arith.constant 0 : index
    %c0_142 = arith.constant 0 : index
    %153 = vector.load %arg2[%c5_140, %c0_141, %c0_142] : memref<9x8x512xf32, #tpu.memory_space<vmem>>, vector<1x8x512xf32>
    %154 = vector.shape_cast %153 : vector<1x8x512xf32> to vector<8x512xf32>
    %155 = arith.mulf %152, %154 : vector<8x512xf32>
    %c40_143 = arith.constant 40 : index
    %c0_144 = arith.constant 0 : index
    %156 = vector.load %arg16[%c40_143, %c0_144] : memref<72x512xf32, #tpu.memory_space<vmem>>, vector<8x512xf32>
    tpu.vector_store %arg16[%c40_143, %c0_144], %155 {strides = array<i32>} : memref<72x512xf32, #tpu.memory_space<vmem>>, vector<8x512xf32>,
    %c497_i32_145 = arith.constant 497 : i32
    %157 = tpu.dynamic_rotate %130 by %c497_i32_145 dim 1 : vector<8x512xf32>, i32 -> vector<8x512xf32>
    %c6_146 = arith.constant 6 : index
    %c0_147 = arith.constant 0 : index
    %c0_148 = arith.constant 0 : index
    %158 = vector.load %arg2[%c6_146, %c0_147, %c0_148] : memref<9x8x512xf32, #tpu.memory_space<vmem>>, vector<1x8x512xf32>
    %159 = vector.shape_cast %158 : vector<1x8x512xf32> to vector<8x512xf32>
    %160 = arith.mulf %157, %159 : vector<8x512xf32>
    %c48_149 = arith.constant 48 : index
    %c0_150 = arith.constant 0 : index
    %161 = vector.load %arg16[%c48_149, %c0_150] : memref<72x512xf32, #tpu.memory_space<vmem>>, vector<8x512xf32>
    tpu.vector_store %arg16[%c48_149, %c0_150], %160 {strides = array<i32>} : memref<72x512xf32, #tpu.memory_space<vmem>>, vector<8x512xf32>,
    %c496_i32_151 = arith.constant 496 : i32
    %162 = tpu.dynamic_rotate %130 by %c496_i32_151 dim 1 : vector<8x512xf32>, i32 -> vector<8x512xf32>
    %c7_152 = arith.constant 7 : index
    %c0_153 = arith.constant 0 : index
    %c0_154 = arith.constant 0 : index
    %163 = vector.load %arg2[%c7_152, %c0_153, %c0_154] : memref<9x8x512xf32, #tpu.memory_space<vmem>>, vector<1x8x512xf32>
    %164 = vector.shape_cast %163 : vector<1x8x512xf32> to vector<8x512xf32>
    %165 = arith.mulf %162, %164 : vector<8x512xf32>
    %c56_155 = arith.constant 56 : index
    %c0_156 = arith.constant 0 : index
    %166 = vector.load %arg16[%c56_155, %c0_156] : memref<72x512xf32, #tpu.memory_space<vmem>>, vector<8x512xf32>
    tpu.vector_store %arg16[%c56_155, %c0_156], %165 {strides = array<i32>} : memref<72x512xf32, #tpu.memory_space<vmem>>, vector<8x512xf32>,
    %c495_i32_157 = arith.constant 495 : i32
    %167 = tpu.dynamic_rotate %130 by %c495_i32_157 dim 1 : vector<8x512xf32>, i32 -> vector<8x512xf32>
    %c8_158 = arith.constant 8 : index
    %c0_159 = arith.constant 0 : index
    %c0_160 = arith.constant 0 : index
    %168 = vector.load %arg2[%c8_158, %c0_159, %c0_160] : memref<9x8x512xf32, #tpu.memory_space<vmem>>, vector<1x8x512xf32>
    %169 = vector.shape_cast %168 : vector<1x8x512xf32> to vector<8x512xf32>
    %170 = arith.mulf %167, %169 : vector<8x512xf32>
    %c64_161 = arith.constant 64 : index
    %c0_162 = arith.constant 0 : index
    %171 = vector.load %arg16[%c64_161, %c0_162] : memref<72x512xf32, #tpu.memory_space<vmem>>, vector<8x512xf32>
    tpu.vector_store %arg16[%c64_161, %c0_162], %170 {strides = array<i32>} : memref<72x512xf32, #tpu.memory_space<vmem>>, vector<8x512xf32>,
    %c0_163 = arith.constant 0 : index
    %c0_164 = arith.constant 0 : index
    %172 = vector.load %arg13[%c0_163, %c0_164] : memref<16x72xbf16, #tpu.memory_space<vmem>>, vector<16x72xbf16>
    %c0_165 = arith.constant 0 : index
    %c0_166 = arith.constant 0 : index
    %173 = vector.load %arg16[%c0_165, %c0_166] : memref<72x512xf32, #tpu.memory_space<vmem>>, vector<72x512xf32>
    %174 = arith.truncf %173 : vector<72x512xf32> to vector<72x512xbf16>
    %cst_167 = arith.constant dense<0.000000e+00> : vector<16x512xf32>
    %175 = tpu.matmul %172, %174, %cst_167 {dimension_numbers = #tpu.dot_dimension_numbers<[1], [0], [0], [1], [0, 0, 1, 1], [], []>} : vector<16x72xbf16>, vector<72x512xbf16>, vector<16x512xf32> -> vector<16x512xf32>
    %c0_168 = arith.constant 0 : index
    %c0_169 = arith.constant 0 : index
    %176 = vector.load %arg14[%c0_168, %c0_169] : memref<16x1xf32, #tpu.memory_space<vmem>>, vector<16x1xf32>
    %177 = vector.broadcast %176 : vector<16x1xf32> to vector<16x512xf32>
    %178 = arith.addf %175, %177 : vector<16x512xf32>
    %cst_170 = arith.constant 1.000000e-01 : f32
    %179 = vector.broadcast %cst_170 : f32 to vector<16x512xf32>
    %180 = arith.mulf %179, %178 : vector<16x512xf32>
    %181 = arith.maximumf %178, %180 : vector<16x512xf32>
    %c0_171 = arith.constant 0 : index
    %c0_172 = arith.constant 0 : index
    %c0_173 = arith.constant 0 : index
    %182 = vector.load %arg15[%c0_171, %c0_172, %c0_173] : memref<1x16x512xf32, #tpu.memory_space<vmem>>, vector<1x16x512xf32>
    %183 = vector.shape_cast %182 : vector<1x16x512xf32> to vector<16x512xf32>
    %184 = vector.shape_cast %181 : vector<16x512xf32> to vector<1x16x512xf32>
    tpu.vector_store %arg15[%c0_171, %c0_172, %c0_173], %184 {strides = array<i32>} : memref<1x16x512xf32, #tpu.memory_space<vmem>>, vector<1x16x512xf32>,
    return
  }
  func.func @transform_0(%arg0: i32) -> (i32, i32, i32) {
    %c0_i32 = arith.constant 0 : i32
    %c0_i32_0 = arith.constant 0 : i32
    %c0_i32_1 = arith.constant 0 : i32
    return %arg0, %c0_i32, %c0_i32_0 : i32, i32, i32
  }
  func.func @transform_1(%arg0: i32) -> (i32, i32, i32) {
    %c0_i32 = arith.constant 0 : i32
    %c0_i32_0 = arith.constant 0 : i32
    %c0_i32_1 = arith.constant 0 : i32
    %c0_i32_2 = arith.constant 0 : i32
    return %c0_i32, %c0_i32_0, %c0_i32_1 : i32, i32, i32
  }
  func.func @transform_2(%arg0: i32) -> (i32, i32) {
    %c0_i32 = arith.constant 0 : i32
    %c0_i32_0 = arith.constant 0 : i32
    %c0_i32_1 = arith.constant 0 : i32
    return %c0_i32, %c0_i32_0 : i32, i32
  }
  func.func @transform_3(%arg0: i32) -> (i32, i32) {
    %c0_i32 = arith.constant 0 : i32
    %c0_i32_0 = arith.constant 0 : i32
    %c0_i32_1 = arith.constant 0 : i32
    return %c0_i32, %c0_i32_0 : i32, i32
  }
  func.func @transform_4(%arg0: i32) -> (i32, i32) {
    %c0_i32 = arith.constant 0 : i32
    %c0_i32_0 = arith.constant 0 : i32
    %c0_i32_1 = arith.constant 0 : i32
    return %c0_i32, %c0_i32_0 : i32, i32
  }
  func.func @transform_5(%arg0: i32) -> (i32, i32) {
    %c0_i32 = arith.constant 0 : i32
    %c0_i32_0 = arith.constant 0 : i32
    %c0_i32_1 = arith.constant 0 : i32
    return %c0_i32, %c0_i32_0 : i32, i32
  }
  func.func @transform_6(%arg0: i32) -> (i32, i32) {
    %c0_i32 = arith.constant 0 : i32
    %c0_i32_0 = arith.constant 0 : i32
    %c0_i32_1 = arith.constant 0 : i32
    return %c0_i32, %c0_i32_0 : i32, i32
  }
  func.func @transform_7(%arg0: i32) -> (i32, i32) {
    %c0_i32 = arith.constant 0 : i32
    %c0_i32_0 = arith.constant 0 : i32
    %c0_i32_1 = arith.constant 0 : i32
    return %c0_i32, %c0_i32_0 : i32, i32
  }
  func.func @transform_8(%arg0: i32) -> (i32, i32) {
    %c0_i32 = arith.constant 0 : i32
    %c0_i32_0 = arith.constant 0 : i32
    %c0_i32_1 = arith.constant 0 : i32
    return %c0_i32, %c0_i32_0 : i32, i32
  }
  func.func @transform_9(%arg0: i32) -> (i32, i32) {
    %c0_i32 = arith.constant 0 : i32
    %c0_i32_0 = arith.constant 0 : i32
    %c0_i32_1 = arith.constant 0 : i32
    return %c0_i32, %c0_i32_0 : i32, i32
  }
  func.func @transform_10(%arg0: i32) -> (i32, i32) {
    %c0_i32 = arith.constant 0 : i32
    %c0_i32_0 = arith.constant 0 : i32
    %c0_i32_1 = arith.constant 0 : i32
    return %c0_i32, %c0_i32_0 : i32, i32
  }
  func.func @transform_11(%arg0: i32) -> (i32, i32) {
    %c0_i32 = arith.constant 0 : i32
    %c0_i32_0 = arith.constant 0 : i32
    %c0_i32_1 = arith.constant 0 : i32
    return %c0_i32, %c0_i32_0 : i32, i32
  }
  func.func @transform_12(%arg0: i32) -> (i32, i32) {
    %c0_i32 = arith.constant 0 : i32
    %c0_i32_0 = arith.constant 0 : i32
    %c0_i32_1 = arith.constant 0 : i32
    return %c0_i32, %c0_i32_0 : i32, i32
  }
  func.func @transform_13(%arg0: i32) -> (i32, i32) {
    %c0_i32 = arith.constant 0 : i32
    %c0_i32_0 = arith.constant 0 : i32
    %c0_i32_1 = arith.constant 0 : i32
    return %c0_i32, %c0_i32_0 : i32, i32
  }
  func.func @transform_14(%arg0: i32) -> (i32, i32, i32) {
    %c0_i32 = arith.constant 0 : i32
    %c0_i32_0 = arith.constant 0 : i32
    %c0_i32_1 = arith.constant 0 : i32
    return %arg0, %c0_i32, %c0_i32_0 : i32, i32, i32
  }
}

</mosaic_0001>

<bundles_post_ra>
// kernel: tpu_custom_call.1
= control target key start
LH: loop header
LB: loop body
LE: loop exit
PB: predicated region body
PF: predicated region fallthrough
CT: control target
= control target key end

     0   :  { %19 = vsyncpa [#allocation4], 0  ;;  %s2480_s0 = inlined_call_operand.vmem [shape: f32[1,4,512], index: 0, kind: input, shape index: {}]   ;;  %s2481_s1 = inlined_call_operand.hbm [shape: f32[9,8,512], index: 1, kind: input, shape index: {}]   ;;  %s2482_s2 = inlined_call_operand.vmem [shape: bf16[8,4], index: 2, kind: input, shape index: {}]   ;;  %s2483_s3 = inlined_call_operand.vmem [shape: f32[8,1], index: 3, kind: input, shape index: {}]   ;;  %s2484_s4 = inlined_call_operand.vmem [shape: bf16[16,72], index: 4, kind: input, shape index: {}]   ;;  %s2485_s5 = inlined_call_operand.vmem [shape: f32[16,1], index: 5, kind: input, shape index: {}]   ;;  %s2486_s6 = inlined_call_operand.vmem [shape: bf16[8,16], index: 6, kind: input, shape index: {}]   ;;  %s2487_s7 = inlined_call_operand.vmem [shape: f32[8,1], index: 7, kind: input, shape index: {}]   ;;  %s2488_s8 = inlined_call_operand.vmem [shape: bf16[16,72], index: 8, kind: input, shape index: {}]   ;;  %s2489_s9 = inlined_call_operand.vmem [shape: f32[16,1], index: 9, kind: input, shape index: {}]   ;;  %s2490_s10 = inlined_call_operand.vmem [shape: bf16[8,16], index: 10, kind: input, shape index: {}]   ;;  %s2491_s11 = inlined_call_operand.vmem [shape: f32[8,1], index: 11, kind: input, shape index: {}]   ;;  %s2492_s12 = inlined_call_operand.vmem [shape: bf16[16,72], index: 12, kind: input, shape index: {}]   ;;  %s2493_s13 = inlined_call_operand.vmem [shape: f32[16,1], index: 13, kind: input, shape index: {}]   ;;  %s2494_s14 = inlined_call_operand.hbm [shape: f32[1,16,512], index: 14, kind: output, shape index: {}]  }
   0x1   :  { %20 = vsyncpa [#allocation5], 0  ;;  %s1693_s29 = smov [#allocation3]  }
   0x2   :  { %s28_s30 = sshll.u32 %s1693_s29, 4  ;;  %s29_s30 = int_to_ptr.vmem [resolvable:$true] %s28_s30 }
   0x3   :  { %s1657_s15 = scalar_lea.vmem %s29_s30, 4608  ;;  %p1662_p1 = scmp.lt.s32.totalorder %s29_s30, %s29_s30 }
   0x4   :  { %p1658_p0 = scmp.ne.s32.totalorder %s29_s30, %s1657_s15  ;;  %p1663_p2 = scmp.lt.s32.totalorder %s1657_s15, %s1657_s15 }
   0x6   :  { %p1664_p3 = por %p1663_p2, %p1662_p1 }
   0x8   :  { %p1665_p4 = pnand %p1664_p3, %p1658_p0 }
   0xa   :  { %1668 = shalt.err (!%p1665_p4)
}
   0xb   :  { %s1694_s16 = smov 512   ;;  %s1695_s17 = smov 32  }
   0xc   :  { %34 = dma.hbm_to_vmem [thread:$0]  %s2481_s1, 4608, %s29_s30, [#allocation4], %s1694_s16, %s1694_s16, %s1695_s17  }
   0xd   :  { %1689 = dma.done.wait [#allocation4], 4608  }
   0xe   :  { %1690 = vsyncadd [#allocation4], 4294962688  ;;  %v2495_v0 = vmov 0   ;;  %v63_v1 = vld [vmem:[%s2480_s0] sm:$0xff]  ;;  %vm86_vm0 = vcmask 1041408   ;;  %v64_v2 = vld [vmem:[%s2480_s0 + $0x8] sm:$0xff]  ;;  %v197_v37 = vlaneseq }
   0xf   :  { %131 = vmatprep.mubr.bf16.mxu0 %v2495_v0  ;;  %172 = vmatprep.mubr.bf16.mxu1 %v2495_v0  ;;  %v68_v3 = vcombine.high %v63_v1, %v63_v1  ;;  %v69_v4 = vcombine.high %v64_v2, %v64_v2  ;;  %v72_v5 = vpack.c.bf16 %v63_v1, %v63_v1  ;;  %v76_v7 = vld [vmem:[%s2483_s3] sm:$0xff]  ;;  %vm82_vm1 = vcmask 31744   ;;  %s1697_s0 = smov 111   ;;  %s1699_s3 = smov 112   ;;  %v461_v34 = vld [vmem:[%s2485_s5 + $0x8] sm:$0xff]  ;;  %v1893_v41 = vld [vmem:[#allocation3 + $0x110] sm:$0xff] }
  0x10   :  { %1642 = vset.pattern.permute.xlu0 %v2495_v0  ;;  %1643 = vset.pattern.permute.xlu1 %v2495_v0  ;;  %v74_v6 = vpack.c.bf16 %v64_v2, %v64_v2  ;;  %v65_v12 = vld [vmem:[%s2482_s2] sm:$0xf]  ;;  %s1698_s2 = smov 113   ;;  %s1700_s27 = smov 127   ;;  %v1886_v38 = vand.u32 127, %v197_v37  ;;  %v1895_v42 = vld [vmem:[#allocation3 + $0x118] sm:$0xff] }
  0x11   :  { %79 = vperm.xlu0 %1642, %v76_v7   ;;  %v73_v8 = vpack.c.bf16 %v68_v3, %v68_v3  ;;  %v75_v9 = vpack.c.bf16 %v69_v4, %v69_v4  ;;  %v88_v10 = vsel %vm86_vm0, %v72_v5, 0  ;;  %s1701_s28 = smov 15   ;;  %s1702_s29 = smov 1   ;;  %v460_v35 = vld [vmem:[%s2485_s5] sm:$0xff]  ;;  %vm481_vm3 = vcmask 1043456   ;;  %v1912_v58 = vld [vmem:[#allocation3 + $0xd0] sm:$0xff] }
  0x12   :  { %v94_v11 = vsel %vm86_vm0, %v74_v6, 0  ;;  %s1703_s30 = smov 17   ;;  %s1704_s15 = smov 16   ;;  %v601_v36 = vld [vmem:[%s2487_s7] sm:$0xff]  ;;  %vm384_vm2 = vcmp.lt.s32.totalorder %v1886_v38, 111  ;;  %vm332_vm4 = vcmp.lt.s32.totalorder %v1886_v38, 113 }
  0x13   :  { %1606 = vmatprep.subr.msk.bf16.mxu0 %vm86_vm0, %v73_v8  ;;  %1608 = vmatprep.subr.msk.bf16.mxu1 %vm86_vm0, %v75_v9  ;;  %v1914_v59 = vld [vmem:[#allocation3 + $0xd8] sm:$0xff]  ;;  %v1921_v62 = vld [vmem:[#allocation3 + $0xf0] sm:$0xff]  ;;  %vm358_vm5 = vcmp.lt.s32.totalorder %v1886_v38, 112  ;;  %vm306_vm6 = vcmp.lt.s32.totalorder %v1886_v38, 127  ;;  %vm276_vm7 = vcmp.lt.s32.totalorder %v1886_v38, 1  ;;  %vm250_vm8 = vcmp.lt.s32.totalorder %v1886_v38, 15 }
  0x14   :  { %114 = vmatpush1.bf16.msra.mxu0 %v88_v10  ;;  %155 = vmatpush1.bf16.msra.mxu1 %v94_v11  ;;  %v1923_v63 = vld [vmem:[#allocation3 + $0xf8] sm:$0xff]  ;;  %v1975_v37 = vld [vmem:[#allocation3 + $0x100] sm:$0xff]  ;;  %vm199_vm9 = vcmp.lt.s32.totalorder %v1886_v38, 17  ;;  %vm224_vm10 = vcmp.lt.s32.totalorder %v1886_v38, 16  ;;  %vm477_vm11 = vcmask 588800   ;;  %vm607_vm12 = vcmask 130048  }
  0x17   :  { %1607 = vmatmul.mubr.msk.bf16.vlgmr.msra.gmra.mxu0 %vm82_vm1, %v65_v12  ;;  %1609 = vmatmul.mubr.msk.bf16.vlgmr.msra.gmra.mxu1 %vm82_vm1, %v65_v12 }
  0x18   :  { %526 = vmatprep.mubr.bf16.mxu0 %v2495_v0  ;;  %569 = vmatprep.mubr.bf16.mxu1 %v2495_v0 }
  0x8c   :  { %v80_v13 = vpop.permute.xlu0 %79 }
  0xd7   :  { %v133_v14 = vpop.f32.mrf.mxu0  ;;  %v174_v15 = vpop.f32.mrf.mxu1 }
  0xd8   :  { %v134_v16 = vadd.f32 %v133_v14, %v80_v13  ;;  %v175_v17 = vadd.f32 %v174_v15, %v80_v13  ;;  %v1940_v14 = vld [vmem:[#allocation3 + $0xb8] sm:$0xff] }
  0xd9   :  { %v135_v18 = vpop.f32.mrf.mxu0  ;;  %v176_v19 = vpop.f32.mrf.mxu1 }
  0xda   :  { %v181_v20 = vmul.f32 0.1, %v134_v16  ;;  %v183_v21 = vmul.f32 0.1, %v175_v17  ;;  %v177_v22 = vadd.f32 %v176_v19, %v80_v13  ;;  %v136_v27 = vadd.f32 %v135_v18, %v80_v13  ;;  %v1938_v13 = vld [vmem:[#allocation3 + $0xb0] sm:$0xff] }
  0xdb   :  { %v137_v23 = vpop.f32.mrf.mxu0  ;;  %v178_v24 = vpop.f32.mrf.mxu1 }
  0xdc   :  { %v1805_v25 = vmax.f32 %v134_v16, %v181_v20  ;;  %v1807_v26 = vmax.f32 %v175_v17, %v183_v21  ;;  %v184_v28 = vmul.f32 0.1, %v177_v22  ;;  %v182_v31 = vmul.f32 0.1, %v136_v27 }
  0xdd   :  { %v138_v29 = vpop.f32.mrf.mxu0  ;;  %v179_v30 = vpop.f32.mrf.mxu1 }
  0xde   :  { %380 = vrot.lane.b32.xlu1 %v1807_v26, %s1697_s0  ;;  %376 = vrot.lane.b32.xlu0 %v1805_v25, %s1697_s0  ;;  %v1813_v32 = vmax.f32 %v177_v22, %v184_v28  ;;  %v1819_v33 = vmax.f32 %v136_v27, %v182_v31  ;;  %v1961_v31 = vld [vmem:[#allocation3 + $0xe8] sm:$0xff] }
  0xe2   :  { %324 = vrot.lane.b32.xlu1 %v1805_v25, %s1698_s2  ;;  %382 = vrot.lane.b32.xlu0 %v1813_v32, %s1697_s0 }
  0xe6   :  { %328 = vrot.lane.b32.xlu1 %v1807_v26, %s1698_s2  ;;  %326 = vrot.lane.b32.xlu0 %v1819_v33, %s1698_s2 }
  0xea   :  { %350 = vrot.lane.b32.xlu1 %v1805_v25, %s1699_s3  ;;  %330 = vrot.lane.b32.xlu0 %v1813_v32, %s1698_s2 }
  0xee   :  { %354 = vrot.lane.b32.xlu1 %v1807_v26, %s1699_s3  ;;  %352 = vrot.lane.b32.xlu0 %v1819_v33, %s1699_s3 }
  0xf2   :  { %298 = vrot.lane.b32.xlu1 %v1805_v25, %s1700_s27  ;;  %356 = vrot.lane.b32.xlu0 %v1813_v32, %s1699_s3 }
  0xf6   :  { %302 = vrot.lane.b32.xlu1 %v1807_v26, %s1700_s27  ;;  %300 = vrot.lane.b32.xlu0 %v1819_v33, %s1700_s27 }
  0xfa   :  { %242 = vrot.lane.b32.xlu1 %v1805_v25, %s1701_s28  ;;  %304 = vrot.lane.b32.xlu0 %v1813_v32, %s1700_s27 }
  0xfe   :  { %246 = vrot.lane.b32.xlu1 %v1807_v26, %s1701_s28  ;;  %244 = vrot.lane.b32.xlu0 %v1819_v33, %s1701_s28 }
 0x102   :  { %268 = vrot.lane.b32.xlu1 %v1805_v25, %s1702_s29  ;;  %248 = vrot.lane.b32.xlu0 %v1813_v32, %s1701_s28 }
 0x106   :  { %272 = vrot.lane.b32.xlu1 %v1807_v26, %s1702_s29  ;;  %270 = vrot.lane.b32.xlu0 %v1819_v33, %s1702_s29 }
 0x10a   :  { %378 = vrot.lane.b32.xlu1 %v1819_v33, %s1697_s0  ;;  %274 = vrot.lane.b32.xlu0 %v1813_v32, %s1702_s29 }
 0x10e   :  { %189 = vrot.lane.b32.xlu1 %v1805_v25, %s1703_s30  ;;  %191 = vrot.lane.b32.xlu0 %v1819_v33, %s1703_s30 }
 0x112   :  { %193 = vrot.lane.b32.xlu1 %v1807_v26, %s1703_s30  ;;  %195 = vrot.lane.b32.xlu0 %v1813_v32, %s1703_s30 }
 0x116   :  { %216 = vrot.lane.b32.xlu1 %v1805_v25, %s1704_s15  ;;  %218 = vrot.lane.b32.xlu0 %v1819_v33, %s1704_s15 }
 0x11a   :  { %220 = vrot.lane.b32.xlu1 %v1807_v26, %s1704_s15  ;;  %222 = vrot.lane.b32.xlu0 %v1813_v32, %s1704_s15 }
 0x11e   :  { %469 = vperm.xlu0 %1642, %v461_v34   ;;  %464 = vperm.xlu1 %1643, %v460_v35   ;;  %v1966_v34 = vld [vmem:[#allocation3 + $0x58] sm:$0xff] }
 0x122   :  { %604 = vperm.xlu1 %1643, %v601_v36  }
 0x150   :  { %v1888_v39 = vpop.permute.xlu1 %380  ;;  %v1890_v40 = vpop.permute.xlu0 %376 }
 0x154   :  { %v1897_v43 = vpop.permute.xlu1 %324  ;;  %v383_v44 = vpop.permute.xlu0 %382 }
 0x155   :  { %v385_v45 = vsel %vm384_vm2, %v1888_v39, %v383_v44  ;;  %v388_v46 = vsel %vm384_vm2, %v383_v44, %v1890_v40  ;;  %v1977_v44 = vld [vmem:[#allocation3 + $0x108] sm:$0xff] }
 0x156   :  { %v396_v47 = vmul.f32 %v1893_v41, %v385_v45  ;;  %v397_v48 = vmul.f32 %v1895_v42, %v388_v46  ;;  %v1979_v45 = vld [vmem:[#allocation3 + $0x78] sm:$0xff] }
 0x158   :  { %v458_v49 = vpack.c.bf16 %v396_v47, %v396_v47  ;;  %v459_v50 = vpack.c.bf16 %v397_v48, %v397_v48  ;;  %v329_v51 = vpop.permute.xlu1 %328  ;;  %v1907_v52 = vpop.permute.xlu0 %326 }
 0x159   :  { %v334_v46 = vsel %vm332_vm4, %v1907_v52, %v329_v51 }
 0x15a   :  { %1613 = vmatprep.subr.msk.bf16.mxu1 %vm481_vm3, %v459_v50  ;;  %v489_v53 = vsel %vm481_vm3, %v458_v49, 0  ;;  %v1987_v49 = vld [vmem:[#allocation3 + $0x50] sm:$0xff] }
 0x15b   :  { %544 = vmatpush1.bf16.msra.mxu1 %v489_v53 }
 0x15c   :  { %v351_v54 = vpop.permute.xlu1 %350  ;;  %v331_v55 = vpop.permute.xlu0 %330 }
 0x15d   :  { %v333_v60 = vsel %vm332_vm4, %v329_v51, %v331_v55  ;;  %v336_v61 = vsel %vm332_vm4, %v331_v55, %v1897_v43 }
 0x15e   :  { %v344_v5 = vmul.f32 %v1912_v58, %v333_v60  ;;  %v345_v6 = vmul.f32 %v1914_v59, %v336_v61  ;;  %v2003_v61 = vld [vmem:[#allocation3 + $0xe0] sm:$0xff] }
 0x160   :  { %v355_v56 = vpop.permute.xlu1 %354  ;;  %v353_v57 = vpop.permute.xlu0 %352 }
 0x161   :  { %v361_v47 = vsel %vm358_vm5, %v351_v54, %v353_v57 }
 0x164   :  { %v1926_v1 = vpop.permute.xlu1 %298  ;;  %v357_v2 = vpop.permute.xlu0 %356 }
 0x165   :  { %v359_v3 = vsel %vm358_vm5, %v355_v56, %v357_v2  ;;  %v362_v4 = vsel %vm358_vm5, %v357_v2, %v351_v54 }
 0x166   :  { %v370_v7 = vmul.f32 %v1921_v62, %v359_v3  ;;  %v371_v8 = vmul.f32 %v1923_v63, %v362_v4 }
 0x168   :  { %v454_v9 = vpack.c.bf16 %v370_v7, %v344_v5  ;;  %v303_v10 = vpop.permute.xlu1 %302  ;;  %v1936_v11 = vpop.permute.xlu0 %300  ;;  %v455_v12 = vpack.c.bf16 %v371_v8, %v345_v6  ;;  %v2013_v6 = vld [vmem:[#allocation3 + $0xa8] sm:$0xff]  ;;  %v2019_v8 = vld [vmem:[#allocation3 + $0xc0] sm:$0xff] }
 0x16a   :  { %545 = vmatprep.subr.bf16.mxu1 %v455_v12 }
 0x16b   :  { %546 = vmatpush1.bf16.msra.mxu1 %v454_v9 }
 0x16c   :  { %v1943_v15 = vpop.permute.xlu1 %242  ;;  %v305_v16 = vpop.permute.xlu0 %304 }
 0x16d   :  { %v307_v17 = vsel %vm306_vm6, %v303_v10, %v305_v16  ;;  %v310_v18 = vsel %vm306_vm6, %v305_v16, %v1926_v1 }
 0x16e   :  { %v318_v19 = vmul.f32 %v1938_v13, %v307_v17  ;;  %v319_v20 = vmul.f32 %v1940_v14, %v310_v18 }
 0x170   :  { %v450_v21 = vpack.c.bf16 %v318_v19, %v1807_v26  ;;  %v247_v22 = vpop.permute.xlu1 %246  ;;  %v1953_v23 = vpop.permute.xlu0 %244  ;;  %v451_v24 = vpack.c.bf16 %v319_v20, %v1813_v32  ;;  %v360_v26 = vsel %vm358_vm5, %v353_v57, %v355_v56  ;;  %v1968_v32 = vld [vmem:[#allocation3 + $0x70] sm:$0xff]  ;;  %v1992_v56 = vld [vmem:[#allocation3 + $0xc8] sm:$0xff]  ;;  %v368_v20 = vmul.f32 %v2003_v61, %v361_v47 }
 0x171   :  { %v369_v48 = vmul.f32 %v1961_v31, %v360_v26  ;;  %v252_v50 = vsel %vm250_vm8, %v1953_v23, %v247_v22  ;;  %v343_v9 = vmul.f32 %v1992_v56, %v334_v46  ;;  %v2033_v26 = vld [vmem:[#allocation3 + $0x68] sm:$0xff] }
 0x172   :  { %547 = vmatprep.subr.bf16.mxu1 %v451_v24  ;;  %v262_v7 = vmul.f32 %v1987_v49, %v252_v50  ;;  %v2039_v47 = vld [vmem:[#allocation3 + $0x48] sm:$0xff]  ;;  %v2045_v50 = vld [vmem:[#allocation3 + $0x60] sm:$0xff] }
 0x173   :  { %548 = vmatpush1.bf16.msra.mxu1 %v450_v21  ;;  %v453_v24 = vpack.c.bf16 %v369_v48, %v343_v9  ;;  %v253_v48 = vsel %vm250_vm8, %v1943_v15, %v1953_v23 }
 0x174   :  { %v1956_v27 = vpop.permute.xlu1 %268  ;;  %v1958_v28 = vpop.permute.xlu0 %248 }
 0x175   :  { %v251_v36 = vsel %vm250_vm8, %v247_v22, %v1958_v28  ;;  %v254_v23 = vsel %vm250_vm8, %v1958_v28, %v1943_v15  ;;  %v2073_v28 = vld [vmem:[#allocation3] sm:$0xff] }
 0x176   :  { %v263_v2 = vmul.f32 %v1966_v34, %v251_v36 }
 0x178   :  { %v273_v29 = vpop.permute.xlu1 %272  ;;  %v271_v30 = vpop.permute.xlu0 %270 }
 0x179   :  { %v278_v35 = vsel %vm276_vm7, %v271_v30, %v273_v29 }
 0x17a   :  { %v288_v60 = vmul.f32 %v1968_v32, %v278_v35  ;;  %v279_v35 = vsel %vm276_vm7, %v1956_v27, %v271_v30 }
 0x17c   :  { %v379_v53 = vpop.permute.xlu1 %378  ;;  %v275_v55 = vpop.permute.xlu0 %274 }
 0x17d   :  { %v386_v51 = vsel %vm384_vm2, %v379_v53, %v1888_v39  ;;  %v387_v54 = vsel %vm384_vm2, %v1890_v40, %v379_v53  ;;  %v277_v57 = vsel %vm276_vm7, %v273_v29, %v275_v55  ;;  %v335_v39 = vsel %vm332_vm4, %v1897_v43, %v1907_v52  ;;  %v2023_v43 = vld [vmem:[#allocation3 + $0xa0] sm:$0xff] }
 0x17e   :  { %v394_v3 = vmul.f32 %v1975_v37, %v387_v54  ;;  %v395_v4 = vmul.f32 %v1977_v44, %v386_v51  ;;  %v289_v5 = vmul.f32 %v1979_v45, %v277_v57  ;;  %v308_v40 = vsel %vm306_vm6, %v1936_v11, %v303_v10  ;;  %v2054_v51 = vld [vmem:[#allocation3 + $0x40] sm:$0xff]  ;;  %v2060_v54 = vld [vmem:[#allocation3 + $0x28] sm:$0xff] }
 0x17f   :  { %v309_v52 = vsel %vm306_vm6, %v1926_v1, %v1936_v11  ;;  %v446_v10 = vpack.c.bf16 %v288_v60, %v262_v7  ;;  %v317_v21 = vmul.f32 %v2013_v6, %v308_v40  ;;  %v342_v29 = vmul.f32 %v2019_v8, %v335_v39  ;;  %v2080_v7 = vld [vmem:[#allocation3 + $0x18] sm:$0xff] }
 0x180   :  { %v456_v12 = vpack.c.bf16 %v394_v3, %v394_v3  ;;  %v457_v16 = vpack.c.bf16 %v395_v4, %v395_v4  ;;  %v190_v17 = vpop.permute.xlu1 %189  ;;  %v192_v18 = vpop.permute.xlu0 %191  ;;  %v447_v19 = vpack.c.bf16 %v289_v5, %v263_v2  ;;  %v316_v1 = vmul.f32 %v2023_v43, %v309_v52  ;;  %v2065_v3 = vld [vmem:[#allocation3 + $0x8] sm:$0xff]  ;;  %v2069_v5 = vld [vmem:[#allocation3 + $0x10] sm:$0xff] }
 0x181   :  { %v452_v46 = vpack.c.bf16 %v368_v20, %v342_v29  ;;  %v280_v30 = vsel %vm276_vm7, %v275_v55, %v1956_v27  ;;  %v287_v53 = vmul.f32 %v2033_v26, %v279_v35  ;;  %v449_v60 = vpack.c.bf16 %v317_v21, %v1819_v33  ;;  %v2089_v20 = vld [vmem:[#allocation3 + $0x38] sm:$0xff] }
 0x182   :  { %1611 = vmatprep.subr.msk.bf16.mxu0 %vm481_vm3, %v457_v16  ;;  %549 = vmatprep.subr.bf16.mxu1 %v447_v19  ;;  %v483_v22 = vsel %vm481_vm3, %v456_v12, 0  ;;  %v448_v27 = vpack.c.bf16 %v316_v1, %v1805_v25  ;;  %v261_v55 = vmul.f32 %v2039_v47, %v253_v48  ;;  %v286_v57 = vmul.f32 %v2045_v50, %v280_v30  ;;  %v2087_v19 = vld [vmem:[#allocation3 + $0x20] sm:$0xff] }
 0x183   :  { %501 = vmatpush1.bf16.msra.mxu0 %v483_v22  ;;  %550 = vmatpush1.bf16.msra.mxu1 %v446_v10  ;;  %v202_v4 = vsel %vm199_vm9, %v190_v17, %v192_v18  ;;  %v260_v40 = vmul.f32 %v2054_v51, %v254_v23 }
 0x184   :  { %v194_v11 = vpop.permute.xlu1 %193  ;;  %502 = vmatprep.subr.bf16.mxu0 %v453_v24  ;;  %v196_v36 = vpop.permute.xlu0 %195  ;;  %v445_v16 = vpack.c.bf16 %v287_v53, %v261_v55  ;;  %v209_v52 = vmul.f32 %v2065_v3, %v202_v4 }
 0x185   :  { %v201_v15 = vsel %vm199_vm9, %v192_v18, %v194_v11  ;;  %v203_v25 = vsel %vm199_vm9, %v196_v36, %v190_v17  ;;  %v200_v9 = vsel %vm199_vm9, %v194_v11, %v196_v36  ;;  %v2085_v18 = vld [vmem:[#allocation3 + $0x30] sm:$0xff]  ;;  %v444_v17 = vpack.c.bf16 %v286_v57, %v260_v40 }
 0x186   :  { %v210_v10 = vmul.f32 %v2069_v5, %v201_v15  ;;  %v208_v21 = vmul.f32 %v2073_v28, %v203_v25  ;;  %v211_v29 = vmul.f32 %v2080_v7, %v200_v9 }
 0x187   :  { %503 = vmatpush1.bf16.msra.mxu0 %v452_v46 }
 0x188   :  { %v217_v2 = vpop.permute.xlu1 %216  ;;  %504 = vmatprep.subr.bf16.mxu0 %v449_v60  ;;  %v219_v33 = vpop.permute.xlu0 %218 }
 0x189   :  { %v227_v39 = vsel %vm224_vm10, %v217_v2, %v219_v33 }
 0x18a   :  { %v235_v12 = vmul.f32 %v2060_v54, %v227_v39 }
 0x18b   :  { %505 = vmatpush1.bf16.msra.mxu0 %v448_v27  ;;  %v1646_v27 = vld [vmem:[%s2484_s4] sm:$0xff]  }
 0x18c   :  { %v221_v22 = vpop.permute.xlu1 %220  ;;  %506 = vmatprep.subr.bf16.mxu0 %v445_v16  ;;  %v223_v24 = vpop.permute.xlu0 %222  ;;  %v441_v30 = vpack.c.bf16 %v235_v12, %v209_v52 }
 0x18d   :  { %v226_v35 = vsel %vm224_vm10, %v219_v33, %v221_v22  ;;  %v225_v1 = vsel %vm224_vm10, %v221_v22, %v223_v24  ;;  %v228_v11 = vsel %vm224_vm10, %v223_v24, %v217_v2 }
 0x18e   :  { %v236_v36 = vmul.f32 %v2085_v18, %v226_v35  ;;  %v234_v46 = vmul.f32 %v2087_v19, %v228_v11  ;;  %v237_v48 = vmul.f32 %v2089_v20, %v225_v1 }
 0x18f   :  { %507 = vmatpush1.bf16.msra.mxu0 %v444_v17 }
 0x190   :  { %v442_v53 = vpack.c.bf16 %v236_v36, %v210_v10  ;;  %v440_v60 = vpack.c.bf16 %v234_v46, %v208_v21  ;;  %508 = vmatprep.subr.bf16.mxu0 %v441_v30  ;;  %v443_v23 = vpack.c.bf16 %v237_v48, %v211_v29 }
 0x192   :  { %551 = vmatprep.subr.bf16.mxu1 %v443_v23 }
 0x193   :  { %509 = vmatpush1.bf16.msra.mxu0 %v440_v60  ;;  %552 = vmatpush1.bf16.msra.mxu1 %v442_v53 }
 0x196   :  { %1612 = vmatmul.mubr.msk.bf16.vlgmr.msra.gmra.mxu0 %vm477_vm11, %v1646_v27  ;;  %1614 = vmatmul.mubr.msk.bf16.vlgmr.msra.gmra.mxu1 %vm477_vm11, %v1646_v27 }
 0x197   :  { %643 = vmatprep.mubr.bf16.mxu0 %v2495_v0  ;;  %684 = vmatprep.mubr.bf16.mxu1 %v2495_v0 }
 0x199   :  { %v465_v55 = vpop.permute.xlu1 %464  ;;  %v470_v16 = vpop.permute.xlu0 %469 }
 0x256   :  { %v528_v57 = vpop.f32.mrf.mxu0  ;;  %v571_v2 = vpop.f32.mrf.mxu1 }
 0x257   :  { %v529_v33 = vadd.f32 %v528_v57, %v465_v55  ;;  %v572_v40 = vadd.f32 %v571_v2, %v465_v55 }
 0x258   :  { %v530_v4 = vpop.f32.mrf.mxu0  ;;  %v573_v15 = vpop.f32.mrf.mxu1 }
 0x259   :  { %v531_v25 = vadd.f32 %v530_v4, %v465_v55  ;;  %v574_v39 = vadd.f32 %v573_v15, %v465_v55  ;;  %v580_v17 = vmul.f32 0.1, %v529_v33  ;;  %v582_v11 = vmul.f32 0.1, %v572_v40 }
 0x25a   :  { %v532_v9 = vpop.f32.mrf.mxu0  ;;  %v575_v12 = vpop.f32.mrf.mxu1 }
 0x25b   :  { %v533_v52 = vadd.f32 %v532_v9, %v470_v16  ;;  %v576_v10 = vadd.f32 %v575_v12, %v470_v16  ;;  %v581_v24 = vmul.f32 0.1, %v531_v25  ;;  %v583_v29 = vmul.f32 0.1, %v574_v39 }
 0x25c   :  { %v534_v21 = vpop.f32.mrf.mxu0  ;;  %v577_v22 = vpop.f32.mrf.mxu1  ;;  %v588_v2 = vmax.f32 %v529_v33, %v580_v17  ;;  %v590_v4 = vmax.f32 %v572_v40, %v582_v11 }
 0x25d   :  { %v535_v35 = vadd.f32 %v534_v21, %v470_v16  ;;  %v578_v1 = vadd.f32 %v577_v22, %v470_v16  ;;  %v584_v36 = vmul.f32 0.1, %v533_v52  ;;  %v586_v46 = vmul.f32 0.1, %v576_v10  ;;  %v596_v16 = vld [vmem:[%s2486_s6] sm:$0xf]  ;;  %v605_v33 = vpop.permute.xlu1 %604 }
 0x25e   :  { %v589_v23 = vmax.f32 %v531_v25, %v581_v24  ;;  %v591_v27 = vmax.f32 %v574_v39, %v583_v29  ;;  %v2497_v25 = vmov 0  }
 0x25f   :  { %v585_v48 = vmul.f32 0.1, %v535_v35  ;;  %v587_v30 = vmul.f32 0.1, %v578_v1  ;;  %v592_v53 = vmax.f32 %v533_v52, %v584_v36  ;;  %v594_v60 = vmax.f32 %v576_v10, %v586_v46 }
 0x261   :  { %v593_v55 = vmax.f32 %v535_v35, %v585_v48  ;;  %v595_v57 = vmax.f32 %v578_v1, %v587_v30  ;;  %v597_v12 = vpack.c.bf16 %v592_v53, %v588_v2  ;;  %v599_v0 = vpack.c.bf16 %v594_v60, %v590_v4 }
 0x263   :  { %v598_v15 = vpack.c.bf16 %v593_v55, %v589_v23  ;;  %v600_v9 = vpack.c.bf16 %v595_v57, %v591_v27  ;;  %v955_v27 = vld [vmem:[%s2489_s9] sm:$0xff]  ;;  %v956_v55 = vld [vmem:[%s2489_s9 + $0x8] sm:$0xff] }
 0x264   :  { %v1094_v57 = vld [vmem:[%s2491_s11] sm:$0xff] }
 0x265   :  { %625 = vmatprep.subr.bf16.mxu0 %v598_v15  ;;  %666 = vmatprep.subr.bf16.mxu1 %v600_v9 }
 0x266   :  { %626 = vmatpush1.bf16.msra.mxu0 %v597_v12  ;;  %667 = vmatpush1.bf16.msra.mxu1 %v599_v0 }
 0x269   :  { %1615 = vmatmul.mubr.msk.bf16.vlgmr.msra.gmra.mxu0 %vm607_vm12, %v596_v16  ;;  %1616 = vmatmul.mubr.msk.bf16.vlgmr.msra.gmra.mxu1 %vm607_vm12, %v596_v16 }
 0x26a   :  { %1019 = vmatprep.mubr.bf16.mxu0 %v2497_v25  ;;  %1062 = vmatprep.mubr.bf16.mxu1 %v2497_v25 }
 0x329   :  { %v645_v39 = vpop.f32.mrf.mxu0  ;;  %v686_v40 = vpop.f32.mrf.mxu1 }
 0x32a   :  { %v646_v17 = vadd.f32 %v645_v39, %v605_v33  ;;  %v687_v52 = vadd.f32 %v686_v40, %v605_v33 }
 0x32b   :  { %v647_v10 = vpop.f32.mrf.mxu0  ;;  %v688_v0 = vpop.f32.mrf.mxu1 }
 0x32c   :  { %v693_v21 = vmul.f32 0.1, %v646_v17  ;;  %v648_v22 = vadd.f32 %v647_v10, %v605_v33  ;;  %v689_v24 = vadd.f32 %v688_v0, %v605_v33  ;;  %v695_v11 = vmul.f32 0.1, %v687_v52 }
 0x32d   :  { %v649_v29 = vpop.f32.mrf.mxu0  ;;  %v690_v35 = vpop.f32.mrf.mxu1 }
 0x32e   :  { %v2118_v1 = vmax.f32 %v646_v17, %v693_v21  ;;  %v694_v36 = vmul.f32 0.1, %v648_v22  ;;  %v696_v53 = vmul.f32 0.1, %v689_v24  ;;  %v2124_v60 = vmax.f32 %v687_v52, %v695_v11 }
 0x32f   :  { %v650_v46 = vpop.f32.mrf.mxu0  ;;  %v691_v48 = vpop.f32.mrf.mxu1 }
 0x330   :  { %v2120_v30 = vmax.f32 %v648_v22, %v694_v36  ;;  %873 = vrot.lane.b32.xlu0 %v2118_v1, %s1697_s0  ;;  %v2128_v23 = vmax.f32 %v689_v24, %v696_v53 }
 0x332   :  { %875 = vrot.lane.b32.xlu1 %v2120_v30, %s1697_s0 }
 0x334   :  { %877 = vrot.lane.b32.xlu0 %v2124_v60, %s1697_s0 }
 0x336   :  { %879 = vrot.lane.b32.xlu1 %v2128_v23, %s1697_s0 }
 0x338   :  { %825 = vrot.lane.b32.xlu0 %v2118_v1, %s1698_s2 }
 0x33a   :  { %827 = vrot.lane.b32.xlu1 %v2120_v30, %s1698_s2 }
 0x33c   :  { %829 = vrot.lane.b32.xlu0 %v2124_v60, %s1698_s2 }
 0x33e   :  { %831 = vrot.lane.b32.xlu1 %v2128_v23, %s1698_s2 }
 0x340   :  { %849 = vrot.lane.b32.xlu0 %v2118_v1, %s1699_s3 }
 0x342   :  { %851 = vrot.lane.b32.xlu1 %v2120_v30, %s1699_s3 }
 0x344   :  { %853 = vrot.lane.b32.xlu0 %v2124_v60, %s1699_s3 }
 0x346   :  { %855 = vrot.lane.b32.xlu1 %v2128_v23, %s1699_s3 }
 0x348   :  { %801 = vrot.lane.b32.xlu0 %v2118_v1, %s1700_s27 }
 0x34a   :  { %803 = vrot.lane.b32.xlu1 %v2120_v30, %s1700_s27 }
 0x34c   :  { %805 = vrot.lane.b32.xlu0 %v2124_v60, %s1700_s27 }
 0x34e   :  { %807 = vrot.lane.b32.xlu1 %v2128_v23, %s1700_s27 }
 0x350   :  { %749 = vrot.lane.b32.xlu0 %v2118_v1, %s1701_s28 }
 0x352   :  { %751 = vrot.lane.b32.xlu1 %v2120_v30, %s1701_s28 }
 0x354   :  { %753 = vrot.lane.b32.xlu0 %v2124_v60, %s1701_s28 }
 0x356   :  { %755 = vrot.lane.b32.xlu1 %v2128_v23, %s1701_s28 }
 0x358   :  { %773 = vrot.lane.b32.xlu0 %v2118_v1, %s1702_s29 }
 0x35a   :  { %775 = vrot.lane.b32.xlu1 %v2120_v30, %s1702_s29 }
 0x35c   :  { %777 = vrot.lane.b32.xlu0 %v2124_v60, %s1702_s29 }
 0x35e   :  { %779 = vrot.lane.b32.xlu1 %v2128_v23, %s1702_s29 }
 0x360   :  { %701 = vrot.lane.b32.xlu0 %v2118_v1, %s1703_s30 }
 0x362   :  { %703 = vrot.lane.b32.xlu1 %v2120_v30, %s1703_s30 }
 0x364   :  { %705 = vrot.lane.b32.xlu0 %v2124_v60, %s1703_s30 }
 0x366   :  { %707 = vrot.lane.b32.xlu1 %v2128_v23, %s1703_s30 }
 0x368   :  { %725 = vrot.lane.b32.xlu0 %v2118_v1, %s1704_s15 }
 0x36a   :  { %727 = vrot.lane.b32.xlu1 %v2120_v30, %s1704_s15 }
 0x36c   :  { %729 = vrot.lane.b32.xlu0 %v2124_v60, %s1704_s15 }
 0x36e   :  { %731 = vrot.lane.b32.xlu1 %v2128_v23, %s1704_s15 }
 0x370   :  { %959 = vperm.xlu0 %1642, %v955_v27  }
 0x372   :  { %964 = vperm.xlu1 %1643, %v956_v55  }
 0x374   :  { %1097 = vperm.xlu0 %1642, %v1094_v57  }
 0x3a2   :  { %v874_v2 = vpop.permute.xlu0 %873 }
 0x3a4   :  { %v876_v4 = vpop.permute.xlu1 %875 }
 0x3a5   :  { %v883_v15 = vsel %vm384_vm2, %v874_v2, %v876_v4 }
 0x3a6   :  { %v889_v9 = vmul.f32 %v883_v15, %v1975_v37  ;;  %v878_v12 = vpop.permute.xlu0 %877 }
 0x3a7   :  { %v882_v16 = vsel %vm384_vm2, %v876_v4, %v878_v12 }
 0x3a8   :  { %v951_v33 = vpack.c.bf16 %v889_v9, %v889_v9  ;;  %v890_v39 = vmul.f32 %v882_v16, %v1977_v44  ;;  %v880_v40 = vpop.permute.xlu1 %879 }
 0x3a9   :  { %v881_v17 = vsel %vm384_vm2, %v878_v12, %v880_v40  ;;  %v884_v52 = vsel %vm384_vm2, %v880_v40, %v874_v2 }
 0x3aa   :  { %v952_v10 = vpack.c.bf16 %v890_v39, %v890_v39  ;;  %v891_v0 = vmul.f32 %v881_v17, %v1893_v41  ;;  %v892_v21 = vmul.f32 %v884_v52, %v1895_v42  ;;  %v826_v22 = vpop.permute.xlu0 %825  ;;  %v976_v11 = vsel %vm481_vm3, %v951_v33, 0 }
 0x3ac   :  { %v953_v24 = vpack.c.bf16 %v891_v0, %v891_v0  ;;  %v954_v29 = vpack.c.bf16 %v892_v21, %v892_v21  ;;  %v828_v35 = vpop.permute.xlu1 %827  ;;  %1618 = vmatprep.subr.msk.bf16.mxu0 %vm481_vm3, %v952_v10 }
 0x3ad   :  { %994 = vmatpush1.bf16.msra.mxu0 %v976_v11  ;;  %v835_v55 = vsel %vm332_vm4, %v826_v22, %v828_v35 }
 0x3ae   :  { %1620 = vmatprep.subr.msk.bf16.mxu1 %vm481_vm3, %v954_v29  ;;  %v830_v36 = vpop.permute.xlu0 %829  ;;  %v982_v46 = vsel %vm481_vm3, %v953_v24, 0  ;;  %v841_v39 = vmul.f32 %v835_v55, %v2019_v8 }
 0x3af   :  { %1037 = vmatpush1.bf16.msra.mxu1 %v982_v46  ;;  %v834_v42 = vsel %vm332_vm4, %v828_v35, %v830_v36 }
 0x3b0   :  { %v832_v48 = vpop.permute.xlu1 %831  ;;  %v842_v12 = vmul.f32 %v834_v42, %v1992_v56 }
 0x3b1   :  { %v833_v57 = vsel %vm332_vm4, %v830_v36, %v832_v48  ;;  %v836_v4 = vsel %vm332_vm4, %v832_v48, %v826_v22 }
 0x3b2   :  { %v850_v53 = vpop.permute.xlu0 %849  ;;  %v843_v40 = vmul.f32 %v833_v57, %v1912_v58 }
 0x3b4   :  { %v852_v41 = vpop.permute.xlu1 %851 }
 0x3b5   :  { %v859_v27 = vsel %vm358_vm5, %v850_v53, %v852_v41 }
 0x3b6   :  { %v854_v2 = vpop.permute.xlu0 %853  ;;  %v865_v15 = vmul.f32 %v859_v27, %v2003_v61  ;;  %v844_v61 = vmul.f32 %v836_v4, %v1914_v59 }
 0x3b7   :  { %v858_v9 = vsel %vm358_vm5, %v852_v41, %v854_v2 }
 0x3b8   :  { %v866_v16 = vmul.f32 %v858_v9, %v1961_v31  ;;  %v856_v33 = vpop.permute.xlu1 %855  ;;  %v947_v31 = vpack.c.bf16 %v865_v15, %v841_v39 }
 0x3b9   :  { %v857_v17 = vsel %vm358_vm5, %v854_v2, %v856_v33  ;;  %v860_v52 = vsel %vm358_vm5, %v856_v33, %v850_v53 }
 0x3ba   :  { %v867_v10 = vmul.f32 %v857_v17, %v1921_v62  ;;  %v868_v0 = vmul.f32 %v860_v52, %v1923_v63  ;;  %v802_v56 = vpop.permute.xlu0 %801  ;;  %v948_v21 = vpack.c.bf16 %v866_v16, %v842_v12 }
 0x3bc   :  { %v949_v22 = vpack.c.bf16 %v867_v10, %v843_v40  ;;  %v804_v24 = vpop.permute.xlu1 %803  ;;  %995 = vmatprep.subr.bf16.mxu0 %v948_v21  ;;  %v950_v8 = vpack.c.bf16 %v868_v0, %v844_v61 }
 0x3bd   :  { %v811_v58 = vsel %vm306_vm6, %v802_v56, %v804_v24  ;;  %996 = vmatpush1.bf16.msra.mxu0 %v947_v31 }
 0x3be   :  { %1038 = vmatprep.subr.bf16.mxu1 %v950_v8  ;;  %v806_v29 = vpop.permute.xlu0 %805  ;;  %v817_v35 = vmul.f32 %v811_v58, %v2023_v43 }
 0x3bf   :  { %v810_v59 = vsel %vm306_vm6, %v804_v24, %v806_v29  ;;  %1039 = vmatpush1.bf16.msra.mxu1 %v949_v22 }
 0x3c0   :  { %v818_v62 = vmul.f32 %v810_v59, %v2013_v6  ;;  %v808_v63 = vpop.permute.xlu1 %807  ;;  %v943_v41 = vpack.c.bf16 %v817_v35, %v2118_v1 }
 0x3c1   :  { %v809_v11 = vsel %vm306_vm6, %v806_v29, %v808_v63  ;;  %v812_v36 = vsel %vm306_vm6, %v808_v63, %v802_v56 }
 0x3c2   :  { %v819_v46 = vmul.f32 %v809_v11, %v1938_v13  ;;  %v820_v48 = vmul.f32 %v812_v36, %v1940_v14  ;;  %v750_v53 = vpop.permute.xlu0 %749  ;;  %v944_v43 = vpack.c.bf16 %v818_v62, %v2120_v30 }
 0x3c4   :  { %v945_v42 = vpack.c.bf16 %v819_v46, %v2124_v60  ;;  %v752_v27 = vpop.permute.xlu1 %751  ;;  %997 = vmatprep.subr.bf16.mxu0 %v944_v43  ;;  %v946_v6 = vpack.c.bf16 %v820_v48, %v2128_v23 }
 0x3c5   :  { %998 = vmatpush1.bf16.msra.mxu0 %v943_v41  ;;  %v759_v13 = vsel %vm250_vm8, %v750_v53, %v752_v27 }
 0x3c6   :  { %1040 = vmatprep.subr.bf16.mxu1 %v946_v6  ;;  %v754_v55 = vpop.permute.xlu0 %753  ;;  %v766_v1 = vmul.f32 %v759_v13, %v2039_v47  ;;  %v1647_v6 = vld [vmem:[%s2488_s8] sm:$0xff]  }
 0x3c7   :  { %1041 = vmatpush1.bf16.msra.mxu1 %v945_v42  ;;  %v758_v12 = vsel %vm250_vm8, %v752_v27, %v754_v55 }
 0x3c8   :  { %v756_v57 = vpop.permute.xlu1 %755  ;;  %v767_v0 = vmul.f32 %v758_v12, %v1987_v49 }
 0x3c9   :  { %v757_v23 = vsel %vm250_vm8, %v754_v55, %v756_v57  ;;  %v760_v15 = vsel %vm250_vm8, %v756_v57, %v750_v53 }
 0x3ca   :  { %v774_v2 = vpop.permute.xlu0 %773  ;;  %v765_v40 = vmul.f32 %v760_v15, %v2054_v51  ;;  %v768_v17 = vmul.f32 %v757_v23, %v1966_v34 }
 0x3cc   :  { %v776_v14 = vpop.permute.xlu1 %775 }
 0x3cd   :  { %v783_v30 = vsel %vm276_vm7, %v774_v2, %v776_v14 }
 0x3ce   :  { %v790_v60 = vmul.f32 %v783_v30, %v2033_v26  ;;  %v778_v4 = vpop.permute.xlu0 %777 }
 0x3cf   :  { %v782_v9 = vsel %vm276_vm7, %v776_v14, %v778_v4 }
 0x3d0   :  { %v780_v16 = vpop.permute.xlu1 %779  ;;  %v940_v33 = vpack.c.bf16 %v790_v60, %v766_v1  ;;  %v791_v39 = vmul.f32 %v782_v9, %v1968_v32 }
 0x3d1   :  { %v781_v26 = vsel %vm276_vm7, %v778_v4, %v780_v16  ;;  %v784_v47 = vsel %vm276_vm7, %v780_v16, %v774_v2 }
 0x3d2   :  { %v789_v52 = vmul.f32 %v784_v47, %v2045_v50  ;;  %v792_v61 = vmul.f32 %v781_v26, %v1979_v45  ;;  %999 = vmatprep.subr.bf16.mxu0 %v940_v33  ;;  %v702_v10 = vpop.permute.xlu0 %701  ;;  %v941_v31 = vpack.c.bf16 %v791_v39, %v767_v0 }
 0x3d4   :  { %v939_v56 = vpack.c.bf16 %v789_v52, %v765_v40  ;;  %v704_v32 = vpop.permute.xlu1 %703  ;;  %v942_v21 = vpack.c.bf16 %v792_v61, %v768_v17 }
 0x3d5   :  { %v711_v34 = vsel %vm199_vm9, %v702_v10, %v704_v32 }
 0x3d6   :  { %1000 = vmatpush1.bf16.msra.mxu0 %v939_v56  ;;  %1042 = vmatprep.subr.bf16.mxu1 %v942_v21  ;;  %v706_v22 = vpop.permute.xlu0 %705  ;;  %v718_v8 = vmul.f32 %v711_v34, %v2065_v3 }
 0x3d7   :  { %1043 = vmatpush1.bf16.msra.mxu1 %v941_v31  ;;  %v710_v62 = vsel %vm199_vm9, %v704_v32, %v706_v22 }
 0x3d8   :  { %v708_v24 = vpop.permute.xlu1 %707  ;;  %v719_v41 = vmul.f32 %v710_v62, %v2069_v5 }
 0x3d9   :  { %v709_v29 = vsel %vm199_vm9, %v706_v22, %v708_v24  ;;  %v712_v35 = vsel %vm199_vm9, %v708_v24, %v702_v10 }
 0x3da   :  { %v726_v51 = vpop.permute.xlu0 %725  ;;  %v717_v46 = vmul.f32 %v712_v35, %v2073_v28  ;;  %v720_v48 = vmul.f32 %v709_v29, %v2080_v7 }
 0x3dc   :  { %v728_v50 = vpop.permute.xlu1 %727 }
 0x3dd   :  { %v735_v45 = vsel %vm224_vm10, %v726_v51, %v728_v50 }
 0x3de   :  { %v742_v49 = vmul.f32 %v735_v45, %v2060_v54  ;;  %v730_v58 = vpop.permute.xlu0 %729  ;;  %v1089_v45 = vld [vmem:[%s2490_s10] sm:$0xf] }
 0x3df   :  { %v734_v59 = vsel %vm224_vm10, %v728_v50, %v730_v58 }
 0x3e0   :  { %v732_v63 = vpop.permute.xlu1 %731  ;;  %v936_v11 = vpack.c.bf16 %v742_v49, %v718_v8  ;;  %v743_v36 = vmul.f32 %v734_v59, %v2085_v18 }
 0x3e1   :  { %v733_v54 = vsel %vm224_vm10, %v730_v58, %v732_v63  ;;  %v736_v3 = vsel %vm224_vm10, %v732_v63, %v726_v51 }
 0x3e2   :  { %v741_v53 = vmul.f32 %v736_v3, %v2087_v19  ;;  %v744_v43 = vmul.f32 %v733_v54, %v2089_v20  ;;  %1001 = vmatprep.subr.bf16.mxu0 %v936_v11  ;;  %v937_v18 = vpack.c.bf16 %v743_v36, %v719_v41 }
 0x3e4   :  { %v935_v42 = vpack.c.bf16 %v741_v53, %v717_v46  ;;  %v938_v27 = vpack.c.bf16 %v744_v43, %v720_v48 }
 0x3e6   :  { %1002 = vmatpush1.bf16.msra.mxu0 %v935_v42  ;;  %1044 = vmatprep.subr.bf16.mxu1 %v938_v27 }
 0x3e7   :  { %1045 = vmatpush1.bf16.msra.mxu1 %v937_v18 }
 0x3e9   :  { %1619 = vmatmul.mubr.msk.bf16.vlgmr.msra.gmra.mxu0 %vm477_vm11, %v1647_v6 }
 0x3ea   :  { %1621 = vmatmul.mubr.msk.bf16.vlgmr.msra.gmra.mxu1 %vm477_vm11, %v1647_v6  ;;  %1135 = vmatprep.mubr.bf16.mxu0 %v2497_v25  ;;  %v1447_v6 = vld [vmem:[%s2493_s13] sm:$0xff] }
 0x3eb   :  { %1176 = vmatprep.mubr.bf16.mxu1 %v2497_v25  ;;  %v960_v7 = vpop.permute.xlu0 %959 }
 0x3ed   :  { %v965_v57 = vpop.permute.xlu1 %964 }
 0x3ef   :  { %v1098_v8 = vpop.permute.xlu0 %1097 }
 0x4a9   :  { %v1021_v28 = vpop.f32.mrf.mxu0 }
 0x4aa   :  { %v1064_v5 = vpop.f32.mrf.mxu1  ;;  %v1022_v2 = vadd.f32 %v1021_v28, %v960_v7  ;;  %v1448_v28 = vld [vmem:[%s2493_s13 + $0x8] sm:$0xff] }
 0x4ab   :  { %v1023_v19 = vpop.f32.mrf.mxu0  ;;  %v1065_v30 = vadd.f32 %v1064_v5, %v960_v7 }
 0x4ac   :  { %v1024_v20 = vadd.f32 %v1023_v19, %v960_v7  ;;  %v1066_v55 = vpop.f32.mrf.mxu1  ;;  %v1073_v33 = vmul.f32 0.1, %v1022_v2 }
 0x4ad   :  { %v1067_v13 = vadd.f32 %v1066_v55, %v960_v7  ;;  %v1025_v14 = vpop.f32.mrf.mxu0  ;;  %v1075_v40 = vmul.f32 0.1, %v1065_v30 }
 0x4ae   :  { %v1026_v1 = vadd.f32 %v1025_v14, %v965_v57  ;;  %v1068_v60 = vpop.f32.mrf.mxu1  ;;  %v1074_v15 = vmul.f32 0.1, %v1024_v20  ;;  %v1081_v32 = vmax.f32 %v1022_v2, %v1073_v33  ;;  %v1379_v2 = vld [vmem:[#allocation3 + $0x110] sm:$0xff] }
 0x4af   :  { %v1069_v4 = vadd.f32 %v1068_v60, %v965_v57  ;;  %v1027_v23 = vpop.f32.mrf.mxu0  ;;  %v1076_v39 = vmul.f32 0.1, %v1067_v13  ;;  %v1083_v22 = vmax.f32 %v1065_v30, %v1075_v40 }
 0x4b0   :  { %v1077_v9 = vmul.f32 0.1, %v1026_v1  ;;  %v1028_v12 = vadd.f32 %v1027_v23, %v965_v57  ;;  %v1070_v16 = vpop.f32.mrf.mxu1  ;;  %v1082_v10 = vmax.f32 %v1024_v20, %v1074_v15 }
 0x4b1   :  { %v1079_v26 = vmul.f32 0.1, %v1069_v4  ;;  %v1071_v47 = vadd.f32 %v1070_v16, %v965_v57  ;;  %v1084_v21 = vmax.f32 %v1067_v13, %v1076_v39  ;;  %v1380_v13 = vld [vmem:[#allocation3 + $0x118] sm:$0xff] }
 0x4b2   :  { %v1078_v17 = vmul.f32 0.1, %v1028_v12  ;;  %v1085_v52 = vmax.f32 %v1026_v1, %v1077_v9 }
 0x4b3   :  { %v1080_v61 = vmul.f32 0.1, %v1071_v47  ;;  %v1087_v0 = vmax.f32 %v1069_v4, %v1079_v26 }
 0x4b4   :  { %v1086_v56 = vmax.f32 %v1028_v12, %v1078_v17  ;;  %v1090_v51 = vpack.c.bf16 %v1085_v52, %v1081_v32  ;;  %v1353_v17 = vld [vmem:[#allocation3 + $0xe0] sm:$0xff] }
 0x4b5   :  { %v1088_v31 = vmax.f32 %v1071_v47, %v1080_v61  ;;  %v1092_v50 = vpack.c.bf16 %v1087_v0, %v1083_v22  ;;  %v1330_v61 = vld [vmem:[#allocation3 + $0xc8] sm:$0xff]  ;;  %v1329_v32 = vld [vmem:[#allocation3 + $0xc0] sm:$0xff] }
 0x4b6   :  { %v1091_v24 = vpack.c.bf16 %v1086_v56, %v1082_v10  ;;  %v1354_v56 = vld [vmem:[#allocation3 + $0xe8] sm:$0xff] }
 0x4b7   :  { %v1093_v34 = vpack.c.bf16 %v1088_v31, %v1084_v21  ;;  %v1331_v31 = vld [vmem:[#allocation3 + $0xd0] sm:$0xff] }
 0x4b8   :  { %1117 = vmatprep.subr.bf16.mxu0 %v1091_v24 }
 0x4b9   :  { %1118 = vmatpush1.bf16.msra.mxu0 %v1090_v51  ;;  %1158 = vmatprep.subr.bf16.mxu1 %v1093_v34  ;;  %v1332_v51 = vld [vmem:[#allocation3 + $0xd8] sm:$0xff] }
 0x4ba   :  { %1159 = vmatpush1.bf16.msra.mxu1 %v1092_v50 }
 0x4bc   :  { %1622 = vmatmul.mubr.msk.bf16.vlgmr.msra.gmra.mxu0 %vm607_vm12, %v1089_v45 }
 0x4bd   :  { %1623 = vmatmul.mubr.msk.bf16.vlgmr.msra.gmra.mxu1 %vm607_vm12, %v1089_v45  ;;  %1511 = vmatprep.mubr.bf16.mxu0 %v2497_v25 }
 0x4be   :  { %1554 = vmatprep.mubr.bf16.mxu1 %v2497_v25 }
 0x57c   :  { %v1137_v49 = vpop.f32.mrf.mxu0 }
 0x57d   :  { %v1138_v58 = vadd.f32 %v1137_v49, %v1098_v8  ;;  %v1178_v29 = vpop.f32.mrf.mxu1  ;;  %v1356_v49 = vld [vmem:[#allocation3 + $0xf8] sm:$0xff] }
 0x57e   :  { %v1179_v35 = vadd.f32 %v1178_v29, %v1098_v8  ;;  %v1139_v59 = vpop.f32.mrf.mxu0 }
 0x57f   :  { %v1185_v62 = vmul.f32 0.1, %v1138_v58  ;;  %v1140_v63 = vadd.f32 %v1139_v59, %v1098_v8  ;;  %v1180_v11 = vpop.f32.mrf.mxu1 }
 0x580   :  { %v1181_v36 = vadd.f32 %v1180_v11, %v1098_v8  ;;  %v1141_v54 = vpop.f32.mrf.mxu0  ;;  %v1187_v46 = vmul.f32 0.1, %v1179_v35  ;;  %v1355_v8 = vld [vmem:[#allocation3 + $0xf0] sm:$0xff] }
 0x581   :  { %v2317_v3 = vmax.f32 %v1138_v58, %v1185_v62  ;;  %v1186_v48 = vmul.f32 0.1, %v1140_v63  ;;  %v1182_v53 = vpop.f32.mrf.mxu1 }
 0x582   :  { %v1142_v43 = vpop.f32.mrf.mxu0  ;;  %v1188_v25 = vmul.f32 0.1, %v1181_v36  ;;  %v2323_v27 = vmax.f32 %v1179_v35, %v1187_v46 }
 0x583   :  { %v2319_v41 = vmax.f32 %v1140_v63, %v1186_v48  ;;  %1365 = vrot.lane.b32.xlu1 %v2317_v3, %s1697_s0  ;;  %v1183_v42 = vpop.f32.mrf.mxu1 }
 0x584   :  { %v2327_v18 = vmax.f32 %v1181_v36, %v1188_v25  ;;  %v1305_v42 = vld [vmem:[#allocation3 + $0xa0] sm:$0xff] }
 0x585   :  { %1367 = vrot.lane.b32.xlu0 %v2319_v41, %s1697_s0 }
 0x587   :  { %1369 = vrot.lane.b32.xlu1 %v2323_v27, %s1697_s0 }
 0x589   :  { %1371 = vrot.lane.b32.xlu0 %v2327_v18, %s1697_s0 }
 0x58b   :  { %1317 = vrot.lane.b32.xlu1 %v2317_v3, %s1698_s2 }
 0x58d   :  { %1319 = vrot.lane.b32.xlu0 %v2319_v41, %s1698_s2 }
 0x58f   :  { %1321 = vrot.lane.b32.xlu1 %v2323_v27, %s1698_s2 }
 0x591   :  { %1323 = vrot.lane.b32.xlu0 %v2327_v18, %s1698_s2 }
 0x593   :  { %1341 = vrot.lane.b32.xlu1 %v2317_v3, %s1699_s3 }
 0x595   :  { %1343 = vrot.lane.b32.xlu0 %v2319_v41, %s1699_s3 }
 0x597   :  { %1345 = vrot.lane.b32.xlu1 %v2323_v27, %s1699_s3 }
 0x599   :  { %1347 = vrot.lane.b32.xlu0 %v2327_v18, %s1699_s3 }
 0x59b   :  { %1293 = vrot.lane.b32.xlu1 %v2317_v3, %s1700_s27 }
 0x59d   :  { %1295 = vrot.lane.b32.xlu0 %v2319_v41, %s1700_s27 }
 0x59f   :  { %1297 = vrot.lane.b32.xlu1 %v2323_v27, %s1700_s27 }
 0x5a1   :  { %1299 = vrot.lane.b32.xlu0 %v2327_v18, %s1700_s27 }
 0x5a3   :  { %1241 = vrot.lane.b32.xlu1 %v2317_v3, %s1701_s28 }
 0x5a5   :  { %1243 = vrot.lane.b32.xlu0 %v2319_v41, %s1701_s28 }
 0x5a7   :  { %1245 = vrot.lane.b32.xlu1 %v2323_v27, %s1701_s28 }
 0x5a9   :  { %1247 = vrot.lane.b32.xlu0 %v2327_v18, %s1701_s28 }
 0x5ab   :  { %1265 = vrot.lane.b32.xlu1 %v2317_v3, %s1702_s29 }
 0x5ad   :  { %1267 = vrot.lane.b32.xlu0 %v2319_v41, %s1702_s29 }
 0x5af   :  { %1269 = vrot.lane.b32.xlu1 %v2323_v27, %s1702_s29 }
 0x5b1   :  { %1271 = vrot.lane.b32.xlu0 %v2327_v18, %s1702_s29 }
 0x5b3   :  { %1193 = vrot.lane.b32.xlu1 %v2317_v3, %s1703_s30 }
 0x5b5   :  { %1195 = vrot.lane.b32.xlu0 %v2319_v41, %s1703_s30 }
 0x5b7   :  { %1197 = vrot.lane.b32.xlu1 %v2323_v27, %s1703_s30 }
 0x5b9   :  { %1199 = vrot.lane.b32.xlu0 %v2327_v18, %s1703_s30 }
 0x5bb   :  { %1217 = vrot.lane.b32.xlu1 %v2317_v3, %s1704_s15 }
 0x5bd   :  { %1219 = vrot.lane.b32.xlu0 %v2319_v41, %s1704_s15 }
 0x5bf   :  { %1221 = vrot.lane.b32.xlu1 %v2323_v27, %s1704_s15 }
 0x5c1   :  { %1223 = vrot.lane.b32.xlu0 %v2327_v18, %s1704_s15 }
 0x5c3   :  { %1451 = vperm.xlu1 %1643, %v1447_v6  }
 0x5c5   :  { %1456 = vperm.xlu0 %1642, %v1448_v28  }
 0x5f5   :  { %v1366_v5 = vpop.permute.xlu1 %1365 }
 0x5f7   :  { %v1368_v7 = vpop.permute.xlu0 %1367 }
 0x5f8   :  { %v1375_v19 = vsel %vm384_vm2, %v1366_v5, %v1368_v7 }
 0x5f9   :  { %v1381_v20 = vmul.f32 %v1375_v19, %v1975_v37  ;;  %v1370_v55 = vpop.permute.xlu1 %1369 }
 0x5fa   :  { %v1374_v57 = vsel %vm384_vm2, %v1368_v7, %v1370_v55  ;;  %v1306_v7 = vld [vmem:[#allocation3 + $0xa8] sm:$0xff] }
 0x5fb   :  { %v1443_v14 = vpack.c.bf16 %v1381_v20, %v1381_v20  ;;  %v1382_v30 = vmul.f32 %v1374_v57, %v1977_v44  ;;  %v1372_v1 = vpop.permute.xlu0 %1371  ;;  %v1307_v57 = vld [vmem:[#allocation3 + $0xb0] sm:$0xff] }
 0x5fc   :  { %v1373_v60 = vsel %vm384_vm2, %v1370_v55, %v1372_v1  ;;  %v1376_v4 = vsel %vm384_vm2, %v1372_v1, %v1366_v5 }
 0x5fd   :  { %v1444_v23 = vpack.c.bf16 %v1382_v30, %v1382_v30  ;;  %v1383_v15 = vmul.f32 %v1379_v2, %v1373_v60  ;;  %v1384_v9 = vmul.f32 %v1380_v13, %v1376_v4  ;;  %v1318_v37 = vpop.permute.xlu1 %1317  ;;  %v1468_v39 = vsel %vm481_vm3, %v1443_v14, 0  ;;  %v1308_v2 = vld [vmem:[#allocation3 + $0xb8] sm:$0xff] }
 0x5ff   :  { %v1445_v12 = vpack.c.bf16 %v1383_v15, %v1383_v15  ;;  %v1446_v16 = vpack.c.bf16 %v1384_v9, %v1384_v9  ;;  %v1320_v33 = vpop.permute.xlu0 %1319  ;;  %1625 = vmatprep.subr.msk.bf16.mxu0 %vm481_vm3, %v1444_v23 }
 0x600   :  { %1486 = vmatpush1.bf16.msra.mxu0 %v1468_v39  ;;  %v1327_v21 = vsel %vm332_vm4, %v1318_v37, %v1320_v33 }
 0x601   :  { %1627 = vmatprep.subr.msk.bf16.mxu1 %vm481_vm3, %v1446_v16  ;;  %v1322_v44 = vpop.permute.xlu1 %1321  ;;  %v1474_v26 = vsel %vm481_vm3, %v1445_v12, 0  ;;  %v1333_v59 = vmul.f32 %v1329_v32, %v1327_v21  ;;  %v1277_v21 = vld [vmem:[#allocation3 + $0x60] sm:$0xff] }
 0x602   :  { %1529 = vmatpush1.bf16.msra.mxu1 %v1474_v26  ;;  %v1326_v10 = vsel %vm332_vm4, %v1320_v33, %v1322_v44  ;;  %v1254_v26 = vld [vmem:[#allocation3 + $0x48] sm:$0xff] }
 0x603   :  { %v1324_v47 = vpop.permute.xlu0 %1323  ;;  %v1334_v58 = vmul.f32 %v1330_v61, %v1326_v10  ;;  %v1279_v61 = vld [vmem:[#allocation3 + $0x70] sm:$0xff]  ;;  %v1256_v10 = vld [vmem:[#allocation3 + $0x58] sm:$0xff] }
 0x604   :  { %v1325_v22 = vsel %vm332_vm4, %v1322_v44, %v1324_v47  ;;  %v1328_v34 = vsel %vm332_vm4, %v1324_v47, %v1318_v37 }
 0x605   :  { %v1342_v40 = vpop.permute.xlu1 %1341  ;;  %v1335_v62 = vmul.f32 %v1331_v31, %v1325_v22  ;;  %v1336_v36 = vmul.f32 %v1332_v51, %v1328_v34  ;;  %v1280_v31 = vld [vmem:[#allocation3 + $0x78] sm:$0xff]  ;;  %v1255_v22 = vld [vmem:[#allocation3 + $0x50] sm:$0xff] }
 0x607   :  { %v1344_v52 = vpop.permute.xlu0 %1343 }
 0x608   :  { %v1351_v0 = vsel %vm358_vm5, %v1342_v40, %v1344_v52 }
 0x609   :  { %v1346_v24 = vpop.permute.xlu1 %1345  ;;  %v1357_v50 = vmul.f32 %v1353_v17, %v1351_v0  ;;  %v1253_v17 = vld [vmem:[#allocation3 + $0x40] sm:$0xff] }
 0x60a   :  { %v1350_v45 = vsel %vm358_vm5, %v1344_v52, %v1346_v24 }
 0x60b   :  { %v1358_v29 = vmul.f32 %v1354_v56, %v1350_v45  ;;  %v1348_v35 = vpop.permute.xlu0 %1347  ;;  %v1439_v43 = vpack.c.bf16 %v1357_v50, %v1333_v59 }
 0x60c   :  { %v1349_v63 = vsel %vm358_vm5, %v1346_v24, %v1348_v35  ;;  %v1352_v11 = vsel %vm358_vm5, %v1348_v35, %v1342_v40  ;;  %v1278_v40 = vld [vmem:[#allocation3 + $0x68] sm:$0xff] }
 0x60d   :  { %v1359_v54 = vmul.f32 %v1355_v8, %v1349_v63  ;;  %v1360_v46 = vmul.f32 %v1356_v49, %v1352_v11  ;;  %v1294_v48 = vpop.permute.xlu1 %1293  ;;  %v1440_v53 = vpack.c.bf16 %v1358_v29, %v1334_v58 }
 0x60f   :  { %v1441_v25 = vpack.c.bf16 %v1359_v54, %v1335_v62  ;;  %v1296_v6 = vpop.permute.xlu0 %1295  ;;  %1487 = vmatprep.subr.bf16.mxu0 %v1440_v53  ;;  %v1442_v28 = vpack.c.bf16 %v1360_v46, %v1336_v36 }
 0x610   :  { %v1303_v5 = vsel %vm306_vm6, %v1294_v48, %v1296_v6  ;;  %1488 = vmatpush1.bf16.msra.mxu0 %v1439_v43  ;;  %v1206_v43 = vld [vmem:[#allocation3 + $0x8] sm:$0xff] }
 0x611   :  { %1530 = vmatprep.subr.bf16.mxu1 %v1442_v28  ;;  %v1298_v19 = vpop.permute.xlu1 %1297  ;;  %v1309_v20 = vmul.f32 %v1305_v42, %v1303_v5  ;;  %v1230_v42 = vld [vmem:[#allocation3 + $0x28] sm:$0xff] }
 0x612   :  { %v1302_v55 = vsel %vm306_vm6, %v1296_v6, %v1298_v19  ;;  %1531 = vmatpush1.bf16.msra.mxu1 %v1441_v25 }
 0x613   :  { %v1310_v13 = vmul.f32 %v1306_v7, %v1302_v55  ;;  %v1300_v14 = vpop.permute.xlu0 %1299  ;;  %v1435_v9 = vpack.c.bf16 %v1309_v20, %v2317_v3  ;;  %v1205_v7 = vld [vmem:[#allocation3] sm:$0xff]  ;;  %v1231_v20 = vld [vmem:[#allocation3 + $0x30] sm:$0xff] }
 0x614   :  { %v1301_v30 = vsel %vm306_vm6, %v1298_v19, %v1300_v14  ;;  %v1304_v1 = vsel %vm306_vm6, %v1300_v14, %v1294_v48 }
 0x615   :  { %v1311_v60 = vmul.f32 %v1307_v57, %v1301_v30  ;;  %v1312_v4 = vmul.f32 %v1308_v2, %v1304_v1  ;;  %v1242_v23 = vpop.permute.xlu1 %1241  ;;  %v1436_v15 = vpack.c.bf16 %v1310_v13, %v2319_v41  ;;  %v1208_v57 = vld [vmem:[#allocation3 + $0x18] sm:$0xff]  ;;  %v1229_v30 = vld [vmem:[#allocation3 + $0x20] sm:$0xff] }
 0x616   :  { %v1232_v1 = vld [vmem:[#allocation3 + $0x38] sm:$0xff] }
 0x617   :  { %v1437_v37 = vpack.c.bf16 %v1311_v60, %v2323_v27  ;;  %v1244_v12 = vpop.permute.xlu0 %1243  ;;  %1489 = vmatprep.subr.bf16.mxu0 %v1436_v15  ;;  %v1438_v16 = vpack.c.bf16 %v1312_v4, %v2327_v18  ;;  %v1207_v60 = vld [vmem:[#allocation3 + $0x10] sm:$0xff] }
 0x618   :  { %1490 = vmatpush1.bf16.msra.mxu0 %v1435_v9  ;;  %v1251_v47 = vsel %vm250_vm8, %v1242_v23, %v1244_v12 }
 0x619   :  { %1532 = vmatprep.subr.bf16.mxu1 %v1438_v16  ;;  %v1246_v33 = vpop.permute.xlu1 %1245  ;;  %v1258_v27 = vmul.f32 %v1254_v26, %v1251_v47 }
 0x61a   :  { %1533 = vmatpush1.bf16.msra.mxu1 %v1437_v37  ;;  %v1250_v24 = vsel %vm250_vm8, %v1244_v12, %v1246_v33 }
 0x61b   :  { %v1248_v39 = vpop.permute.xlu0 %1247  ;;  %v1259_v62 = vmul.f32 %v1255_v22, %v1250_v24 }
 0x61c   :  { %v1249_v0 = vsel %vm250_vm8, %v1246_v33, %v1248_v39  ;;  %v1252_v56 = vsel %vm250_vm8, %v1248_v39, %v1242_v23 }
 0x61d   :  { %v1266_v44 = vpop.permute.xlu1 %1265  ;;  %v1257_v49 = vmul.f32 %v1253_v17, %v1252_v56  ;;  %v1260_v58 = vmul.f32 %v1256_v10, %v1249_v0 }
 0x61f   :  { %v1268_v41 = vpop.permute.xlu0 %1267 }
 0x620   :  { %v1275_v3 = vsel %vm276_vm7, %v1266_v44, %v1268_v41 }
 0x621   :  { %v1282_v52 = vmul.f32 %v1278_v40, %v1275_v3  ;;  %v1270_v18 = vpop.permute.xlu1 %1269  ;;  %v1648_v3 = vld [vmem:[%s2492_s12] sm:$0xff]   ;;  %s1705_s12 = smov [#allocation6]  }
 0x622   :  { %v1274_v32 = vsel %vm276_vm7, %v1268_v41, %v1270_v18  ;;  %s1594_s28 = sshll.u32 %s1705_s12, 4  ;;  %s1595_s28 = int_to_ptr.vmem [resolvable:$true] %s1594_s28 }
 0x623   :  { %v1272_v51 = vpop.permute.xlu0 %1271  ;;  %v1432_v34 = vpack.c.bf16 %v1282_v52, %v1258_v27  ;;  %v1283_v50 = vmul.f32 %v1279_v61, %v1274_v32  ;;  %s1669_s29 = scalar_lea.vmem %s1595_s28, 1024  ;;  %p1674_p6 = scmp.lt.s32.totalorder %s1595_s28, %s1595_s28 }
 0x624   :  { %v1273_v45 = vsel %vm276_vm7, %v1270_v18, %v1272_v51  ;;  %v1276_v8 = vsel %vm276_vm7, %v1272_v51, %v1266_v44  ;;  %p1670_p5 = scmp.ne.s32.totalorder %s1595_s28, %s1669_s29  ;;  %p1675_p7 = scmp.lt.s32.totalorder %s1669_s29, %s1669_s29 }
 0x625   :  { %v1281_v29 = vmul.f32 %v1277_v21, %v1276_v8  ;;  %v1284_v35 = vmul.f32 %v1280_v31, %v1273_v45  ;;  %1491 = vmatprep.subr.bf16.mxu0 %v1432_v34  ;;  %v1194_v59 = vpop.permute.xlu1 %1193  ;;  %v1433_v54 = vpack.c.bf16 %v1283_v50, %v1259_v62 }
 0x626   :  { %p1676_p8 = por %p1675_p7, %p1674_p6 }
 0x627   :  { %v1431_v63 = vpack.c.bf16 %v1281_v29, %v1257_v49  ;;  %v1196_v11 = vpop.permute.xlu0 %1195  ;;  %v1434_v36 = vpack.c.bf16 %v1284_v35, %v1260_v58 }
 0x628   :  { %v1203_v25 = vsel %vm199_vm9, %v1194_v59, %v1196_v11  ;;  %p1677_p9 = pnand %p1676_p8, %p1670_p5 }
 0x629   :  { %1492 = vmatpush1.bf16.msra.mxu0 %v1431_v63  ;;  %1534 = vmatprep.subr.bf16.mxu1 %v1434_v36  ;;  %v1198_v46 = vpop.permute.xlu1 %1197  ;;  %v1210_v5 = vmul.f32 %v1206_v43, %v1203_v25 }
 0x62a   :  { %1535 = vmatpush1.bf16.msra.mxu1 %v1433_v54  ;;  %v1202_v4 = vsel %vm199_vm9, %v1196_v11, %v1198_v46 }
 0x62b   :  { %v1200_v48 = vpop.permute.xlu0 %1199  ;;  %v1211_v26 = vmul.f32 %v1207_v60, %v1202_v4 }
 0x62c   :  { %v1201_v2 = vsel %vm199_vm9, %v1198_v46, %v1200_v48  ;;  %v1204_v13 = vsel %vm199_vm9, %v1200_v48, %v1194_v59 }
 0x62d   :  { %v1218_v53 = vpop.permute.xlu1 %1217  ;;  %v1209_v16 = vmul.f32 %v1205_v7, %v1204_v13  ;;  %v1212_v33 = vmul.f32 %v1208_v57, %v1201_v2 }
 0x62f   :  { %v1220_v6 = vpop.permute.xlu0 %1219 }
 0x630   :  { %v1227_v28 = vsel %vm224_vm10, %v1218_v53, %v1220_v6 }
 0x631   :  { %v1234_v19 = vmul.f32 %v1230_v42, %v1227_v28  ;;  %v1222_v55 = vpop.permute.xlu1 %1221 }
 0x632   :  { %v1226_v14 = vsel %vm224_vm10, %v1220_v6, %v1222_v55 }
 0x633   :  { %v1224_v23 = vpop.permute.xlu0 %1223  ;;  %v1428_v15 = vpack.c.bf16 %v1234_v19, %v1210_v5  ;;  %v1235_v9 = vmul.f32 %v1231_v20, %v1226_v14 }
 0x634   :  { %v1225_v37 = vsel %vm224_vm10, %v1222_v55, %v1224_v23  ;;  %v1228_v12 = vsel %vm224_vm10, %v1224_v23, %v1218_v53 }
 0x635   :  { %v1233_v39 = vmul.f32 %v1229_v30, %v1228_v12  ;;  %v1236_v44 = vmul.f32 %v1232_v1, %v1225_v37  ;;  %1493 = vmatprep.subr.bf16.mxu0 %v1428_v15  ;;  %v1429_v41 = vpack.c.bf16 %v1235_v9, %v1211_v26 }
 0x637   :  { %v1427_v47 = vpack.c.bf16 %v1233_v39, %v1209_v16  ;;  %v1430_v40 = vpack.c.bf16 %v1236_v44, %v1212_v33 }
 0x639   :  { %1494 = vmatpush1.bf16.msra.mxu0 %v1427_v47  ;;  %1536 = vmatprep.subr.bf16.mxu1 %v1430_v40 }
 0x63a   :  { %1537 = vmatpush1.bf16.msra.mxu1 %v1429_v41 }
 0x63c   :  { %1626 = vmatmul.mubr.msk.bf16.vlgmr.msra.gmra.mxu0 %vm477_vm11, %v1648_v3 }
 0x63d   :  { %1628 = vmatmul.mubr.msk.bf16.vlgmr.msra.gmra.mxu1 %vm477_vm11, %v1648_v3 }
 0x63e   :  { %v1452_v38 = vpop.permute.xlu1 %1451 }
 0x640   :  { %v1457_v32 = vpop.permute.xlu0 %1456 }
 0x6fc   :  { %v1513_v27 = vpop.f32.mrf.mxu0 }
 0x6fd   :  { %v1514_v17 = vadd.f32 %v1513_v27, %v1452_v38  ;;  %v1556_v52 = vpop.f32.mrf.mxu1 }
 0x6fe   :  { %v1557_v61 = vadd.f32 %v1556_v52, %v1452_v38  ;;  %v1515_v18 = vpop.f32.mrf.mxu0 }
 0x6ff   :  { %v1565_v10 = vmul.f32 0.1, %v1514_v17  ;;  %v1516_v0 = vadd.f32 %v1515_v18, %v1452_v38  ;;  %v1558_v56 = vpop.f32.mrf.mxu1 }
 0x700   :  { %v1567_v21 = vmul.f32 0.1, %v1557_v61  ;;  %v1559_v31 = vadd.f32 %v1558_v56, %v1452_v38  ;;  %v1517_v22 = vpop.f32.mrf.mxu0 }
 0x701   :  { %v1573_v24 = vmax.f32 %v1514_v17, %v1565_v10  ;;  %v1566_v51 = vmul.f32 0.1, %v1516_v0  ;;  %v1518_v34 = vadd.f32 %v1517_v22, %v1457_v32  ;;  %v1560_v50 = vpop.f32.mrf.mxu1 }
 0x702   :  { %v1575_v45 = vmax.f32 %v1557_v61, %v1567_v21  ;;  %v1568_v8 = vmul.f32 0.1, %v1559_v31  ;;  %v1561_v49 = vadd.f32 %v1560_v50, %v1457_v32  ;;  %v1519_v58 = vpop.f32.mrf.mxu0 }
 0x703   :  { %1581 = vst [vmem:[#allocation6] sm:$0xff] %v1573_v24  ;;  %v1574_v29 = vmax.f32 %v1516_v0, %v1566_v51  ;;  %v1569_v35 = vmul.f32 0.1, %v1518_v34  ;;  %v1520_v59 = vadd.f32 %v1519_v58, %v1457_v32  ;;  %v1562_v62 = vpop.f32.mrf.mxu1 }
 0x704   :  { %1583 = vst [vmem:[#allocation6 + $0x10] sm:$0xff] %v1575_v45  ;;  %v1576_v63 = vmax.f32 %v1559_v31, %v1568_v8  ;;  %v1571_v11 = vmul.f32 0.1, %v1561_v49  ;;  %v1563_v36 = vadd.f32 %v1562_v62, %v1457_v32 }
 0x705   :  { %1582 = vst [vmem:[#allocation6 + $0x8] sm:$0xff] %v1574_v29  ;;  %v1577_v54 = vmax.f32 %v1518_v34, %v1569_v35  ;;  %v1570_v46 = vmul.f32 0.1, %v1520_v59 }
 0x706   :  { %1584 = vst [vmem:[#allocation6 + $0x18] sm:$0xff] %v1576_v63  ;;  %v1579_v48 = vmax.f32 %v1561_v49, %v1571_v11  ;;  %v1572_v53 = vmul.f32 0.1, %v1563_v36 }
 0x707   :  { %1585 = vst [vmem:[#allocation6 + $0x20] sm:$0xff] %v1577_v54  ;;  %v1578_v43 = vmax.f32 %v1520_v59, %v1570_v46 }
 0x708   :  { %1587 = vst [vmem:[#allocation6 + $0x30] sm:$0xff] %v1579_v48  ;;  %v1580_v25 = vmax.f32 %v1563_v36, %v1572_v53 }
 0x709   :  { %1586 = vst [vmem:[#allocation6 + $0x28] sm:$0xff] %v1578_v43 }
 0x70a   :  { %1588 = vst [vmem:[#allocation6 + $0x38] sm:$0xff] %v1580_v25 }
 0x70b   :  { %1680 = shalt.err (!%p1677_p9)
}
 0x70c   :  { %1600 = dma.vmem_to_hbm [thread:$0]  %s1595_s28, 1024, %s2494_s14, [#allocation5], %s1694_s16, %s1694_s16, %s1695_s17  }
 0x70d   :  { %1691 = dma.done.wait [#allocation5], 1024  }
 0x70e   :  { %1692 = vsyncadd [#allocation5], 4294966272 }
 0x70f   :  { %1604 = vsyncpa [#allocation4], 1 }
 0x710   :  { %1605 = vsyncpa [#allocation5], 1 }

</bundles_post_ra>
